<compile_context>
chip_gen: v6e
topology: v6e:2x2x1
jax: 0.10.0
libtpu: 0.0.40
codegen_flags: <defaults>
</compile_context>

<pallas_src>
import functools

import jax
import jax.numpy as jnp
import numpy as np
from jax.experimental import pallas as pl
from jax.experimental.pallas import tpu as pltpu


def _round_up(x: int, m: int) -> int:
    return (x + m - 1) // m * m


def _default_tile(n: int) -> int:
    """1024 on 128 MiB-VMEM chips (v5e/v6e), 512 on 64 MiB chips (v7x)."""
    try:
        vmem_bytes = pltpu.get_tpu_info().vmem_capacity_bytes
    except Exception:  # interpret mode / unknown chip
        vmem_bytes = 64 * 2 ** 20
    cap = 1024 if vmem_bytes >= 100 * 2 ** 20 else 512
    return min(cap, _round_up(n, 128))


# ----------------------------------------------------------------------------
# GraphConv kernel:  out = (csr @ h + h) @ W + s * b   (+ optional ReLU)
# grid = (row_tiles, csr_col_tiles); the col axis reduces into a VMEM accumulator.
# ----------------------------------------------------------------------------
def _gc_kernel(csr_ref, hk_ref, w_ref, b_ref, s_ref, o_ref, acc_ref,
               *, apply_relu: bool):
    i = pl.program_id(0)
    k = pl.program_id(1)

    @pl.when(k == 0)
    def _():
        acc_ref[...] = jnp.zeros_like(acc_ref)

    # Native bf16 x bf16 MXU matmul, f32 accumulation.
    acc_ref[...] += jnp.dot(csr_ref[...], hk_ref[...],
                            preferred_element_type=jnp.float32)

    # Residual "+ h[i]": the diagonal csr tile (k == i) streams exactly h[i].
    @pl.when(k == i)
    def _():
        acc_ref[...] += hk_ref[...].astype(jnp.float32)

    @pl.when(k == pl.num_programs(1) - 1)
    def _():
        y = jnp.dot(acc_ref[...], w_ref[...], preferred_element_type=jnp.float32)
        y = y + s_ref[...] * b_ref[...]            # per-row bias scale
        if apply_relu:
            y = jnp.maximum(y, 0.0)
        o_ref[...] = y.astype(o_ref.dtype)


def _gc_vmem_bytes(tile, din_pad, dout_pad, csr_isz, h_isz, out_isz) -> int:
    need = (2 * tile * tile * csr_isz          # csr tile, double-buffered
            + 2 * tile * din_pad * h_isz       # h[k] stream, double-buffered
            + 2 * tile * dout_pad * out_isz    # output, double-buffered
            + 2 * din_pad * dout_pad * 4       # W (double-buffered by default)
            + 2 * dout_pad * 4 + 2 * tile * 4  # b, bias scale
            + tile * din_pad * 4)              # accumulator scratch
    # 2x headroom, capped so the same request is safe on v7x's 64 MiB VMEM.
    return int(min(max(2 * need, 32 * 2 ** 20), 64 * 2 ** 20))


def graphconv(csr, h, w_t, b, s, *, apply_relu: bool, out_dtype, tile: int):
    """One GraphConv layer on padded operands.

    csr: (n_pad, n_pad) bf16, h: (n_pad, din_pad) bf16,
    w_t: (din_pad, dout_pad) f32 (pre-transposed), b: (1, dout_pad) f32,
    s:   (n_pad, 1) f32 per-row bias scale.  Returns (n_pad, dout_pad) out_dtype.
    """
    n_pad, din_pad = h.shape
    dout_pad = int(w_t.shape[1])
    grid = (n_pad // tile, n_pad // tile)
    kernel = functools.partial(_gc_kernel, apply_relu=apply_relu)

    out_isz = jnp.dtype(out_dtype).itemsize
    flops = 2 * n_pad * n_pad * din_pad + 2 * n_pad * din_pad * dout_pad
    bytes_accessed = (n_pad * n_pad * csr.dtype.itemsize
                      + grid[0] * n_pad * din_pad * h.dtype.itemsize   # hk re-streams
                      + n_pad * dout_pad * out_isz
                      + din_pad * dout_pad * 4 + dout_pad * 4 + n_pad * 4)

    return pl.pallas_call(
        kernel,
        out_shape=jax.ShapeDtypeStruct((n_pad, dout_pad), out_dtype),
        grid_spec=pltpu.PrefetchScalarGridSpec(
            num_scalar_prefetch=0,
            grid=grid,
            in_specs=[
                pl.BlockSpec((tile, tile), lambda i, k: (i, k)),       # csr tile
                pl.BlockSpec((tile, din_pad), lambda i, k: (k, 0)),    # h (reduction)
                pl.BlockSpec((din_pad, dout_pad), lambda i, k: (0, 0)),  # W^T
                pl.BlockSpec((1, dout_pad), lambda i, k: (0, 0)),      # b
                pl.BlockSpec((tile, 1), lambda i, k: (i, 0)),          # bias scale
            ],
            out_specs=pl.BlockSpec((tile, dout_pad), lambda i, k: (i, 0)),
            scratch_shapes=[pltpu.VMEM((tile, din_pad), jnp.float32)],
        ),
        compiler_params=pltpu.CompilerParams(
            dimension_semantics=("parallel", "arbitrary"),
            vmem_limit_bytes=_gc_vmem_bytes(tile, din_pad, dout_pad,
                                            csr.dtype.itemsize,
                                            h.dtype.itemsize, out_isz),
        ),
        cost_estimate=pl.CostEstimate(flops=int(flops), transcendentals=0,
                                      bytes_accessed=int(bytes_accessed)),
    )(csr, h, w_t, b, s)


# ----------------------------------------------------------------------------
# Sum cross-entropy kernel over row tiles with a (1,1) resident accumulator:
#   loss = sum_i valid_i * [ logsumexp(logits_i[:C]) - logits_i[y_i] ]
# Labels come in as an int32 (tile, 1) block; no dense one-hot is materialized.
# ----------------------------------------------------------------------------
def _ce_kernel(logits_ref, label_ref, valid_ref, o_ref, *, n_classes: int):
    @pl.when(pl.program_id(0) == 0)
    def _():
        o_ref[...] = jnp.zeros_like(o_ref)

    logits = logits_ref[...]                                   # (tile, c_pad) f32
    tm, c_pad = logits.shape
    col = jax.lax.broadcasted_iota(jnp.int32, (tm, c_pad), 1)
    masked = jnp.where(col < n_classes, logits, jnp.float32(-1e30))
    m = jnp.max(masked, axis=-1, keepdims=True)
    lse = m + jnp.log(jnp.sum(jnp.exp(masked - m), axis=-1, keepdims=True))
    picked = jnp.sum(jnp.where(col == label_ref[...], logits, 0.0),
                     axis=-1, keepdims=True)
    contrib = valid_ref[...] * (lse - picked)                  # (tile, 1)
    o_ref[...] += jnp.sum(contrib, keepdims=True)


def cross_entropy_sum(logits, labels, valid, *, n_classes: int, tile: int):
    """logits: (n_pad, c_pad) f32, labels: (n_pad, 1) int32, valid: (n_pad, 1) f32."""
    n_pad, c_pad = logits.shape
    kernel = functools.partial(_ce_kernel, n_classes=n_classes)
    out = pl.pallas_call(
        kernel,
        out_shape=jax.ShapeDtypeStruct((1, 1), jnp.float32),
        grid_spec=pltpu.PrefetchScalarGridSpec(
            num_scalar_prefetch=0,
            grid=(n_pad // tile,),
            in_specs=[
                pl.BlockSpec((tile, c_pad), lambda i: (i, 0)),
                pl.BlockSpec((tile, 1), lambda i: (i, 0)),
                pl.BlockSpec((tile, 1), lambda i: (i, 0)),
            ],
            out_specs=pl.BlockSpec((1, 1), lambda i: (0, 0)),
        ),
        compiler_params=pltpu.CompilerParams(
            dimension_semantics=("arbitrary",),
            vmem_limit_bytes=32 * 2 ** 20,
        ),
        cost_estimate=pl.CostEstimate(
            flops=int(6 * n_pad * c_pad),
            transcendentals=int(n_pad * c_pad + n_pad),
            bytes_accessed=int(n_pad * c_pad * 4 + 2 * n_pad * 4 + 4),
        ),
    )(logits, labels, valid)
    return out[0, 0]


# ----------------------------------------------------------------------------
# Full GCN forward: padding / layout prep in plain JAX, hot path in the kernels.
# ----------------------------------------------------------------------------
def gcn_forward(csr, features, labels, params, *, tile=None):
    """csr: (n,n) dense adjacency; features: (n,in_feats) f32;
    labels: (n,) int32; params: list of PyTorch-Linear (W (out,in), b (out,))."""
    n = int(features.shape[0])
    n_layers = len(params)
    n_classes = int(params[-1][0].shape[0])

    if tile is None:
        tile = _default_tile(n)
    assert tile % 128 == 0
    n_pad = _round_up(n, tile)

    # Padded bf16 adjacency; f32 row sums for the linear-first bias reformulation.
    csr_p = jnp.zeros((n_pad, n_pad), jnp.bfloat16).at[:n, :n].set(
        csr.astype(jnp.bfloat16))
    rowsum = jnp.sum(csr_p.astype(jnp.float32), axis=1, keepdims=True)  # (n_pad,1)
    ones_col = jnp.ones((n_pad, 1), jnp.float32)

    # Per-layer lane padding; activations stream between layers in bf16.
    din0 = int(features.shape[1])
    din0_pad = _round_up(din0, 128)
    h = jnp.zeros((n_pad, din0_pad), jnp.bfloat16)
    h = h.at[:n, :din0].set(features.astype(jnp.bfloat16))

    for li, (w, b) in enumerate(params):
        dout, din = int(w.shape[0]), int(w.shape[1])
        din_pad, dout_pad = _round_up(din, 128), _round_up(dout, 128)
        assert h.shape[1] == din_pad
        agg_first = dout > din
        last = li == n_layers - 1
        # Lane-padded, pre-transposed Linear parameters (h @ W^T + b form).
        w_t = jnp.zeros((din_pad, dout_pad), jnp.float32)
        w_t = w_t.at[:din, :dout].set(jnp.transpose(w).astype(jnp.float32))
        b_p = jnp.zeros((1, dout_pad), jnp.float32).at[0, :dout].set(
            b.astype(jnp.float32))
        # Exact reordering of the linear-first branch:
        #   csr@(hW+b) + (hW+b) == (csr@h + h)@W + (rowsum(csr)+1) * b
        scale = ones_col if agg_first else rowsum + 1.0
        out_dtype = jnp.float32 if last else jnp.bfloat16
        # TODO(synk): nn.Dropout between layers is identity (eval mode / p=0).
        h = graphconv(csr_p, h, w_t, b_p, scale,
                      apply_relu=not last, out_dtype=out_dtype, tile=tile)

    # f32_loss=True: final logits are stored f32.  Sum-CE over the real rows only.
    labels_p = jnp.full((n_pad, 1), -1, jnp.int32).at[:n, 0].set(
        labels.astype(jnp.int32))
    valid = jnp.zeros((n_pad, 1), jnp.float32).at[:n, :].set(1.0)
    return cross_entropy_sum(h, labels_p, valid, n_classes=n_classes, tile=tile)


# Pure-JAX f32 reference (original PyTorch ordering) for correctness checking.
def gcn_forward_ref(csr, features, labels, params):
    csr_f = csr.astype(jnp.float32)
    h = features.astype(jnp.float32)
    n_layers = len(params)
    for i, (w, b) in enumerate(params):
        dout, din = int(w.shape[0]), int(w.shape[1])
        if dout > din:
            h = csr_f @ h + h
            h = h @ w.T + b
        else:
            h = h @ w.T + b
            h = csr_f @ h + h
        if i != n_layers - 1:
            h = jnp.maximum(h, 0.0)
    logits = h.astype(jnp.float32)
    lse = jax.scipy.special.logsumexp(logits, axis=-1)
    picked = jnp.take_along_axis(logits, labels[:, None], axis=-1)[:, 0]
    return jnp.sum(lse - picked)


if __name__ == "__main__":
    # N nodes, in_feats -> n_hidden -> n_hidden -> n_classes   (n_layers=2)
    N, IN_FEATS, N_HIDDEN, N_CLASSES, N_LAYERS = 200, 16, 32, 8, 2

    key = jax.random.PRNGKey(0)
    k_feat, k_adj, k_lab, k_w = jax.random.split(key, 4)

    features = jax.random.normal(k_feat, (N, IN_FEATS), dtype=jnp.float32)
    labels = jax.random.randint(k_lab, (N,), 0, N_CLASSES, dtype=jnp.int32)

    # Dense row-normalized adjacency used as `csr` (torch.matmul(csr, x) analogue).
    # Stored in bfloat16; the reference sees the same bf16 values upcast to f32.
    adj = (jax.random.uniform(k_adj, (N, N)) < 0.05).astype(jnp.float32)
    adj = adj + jnp.eye(N, dtype=jnp.float32)
    deg = jnp.sum(adj, axis=1, keepdims=True)
    csr = (adj / jnp.maximum(deg, 1.0)).astype(jnp.bfloat16)

    # PyTorch-Linear-shaped parameters: W (out, in), b (out,).
    layer_dims = [(IN_FEATS, N_HIDDEN)]
    layer_dims += [(N_HIDDEN, N_HIDDEN)] * (N_LAYERS - 1)
    layer_dims += [(N_HIDDEN, N_CLASSES)]
    params = []
    for din, dout in layer_dims:
        k_w, kw, kb = jax.random.split(k_w, 3)
        bound = 1.0 / np.sqrt(din)
        w = jax.random.uniform(kw, (dout, din), minval=-bound, maxval=bound,
                               dtype=jnp.float32)
        b = jax.random.uniform(kb, (dout,), minval=-bound, maxval=bound,
                               dtype=jnp.float32)
        params.append((w, b))

    # tile=128 exercises a multi-tile (2x2) grid, the k-reduction accumulator, the
    # diagonal-tile residual and node padding (N=200 -> n_pad=256) at small size.
    fwd = jax.jit(functools.partial(gcn_forward, tile=128))
    loss = jax.block_until_ready(fwd(csr, features, labels, params))

    ref = jax.block_until_ready(jax.jit(gcn_forward_ref)(csr, features, labels,
                                                         params))
    # Tolerance accounts for bf16 activations / bf16 MXU products vs the f32
    # reference (accumulation in the kernel is f32 throughout).
    np.testing.assert_allclose(np.asarray(loss), np.asarray(ref),
                               rtol=1e-2, atol=1.0)
    print("KERNEL_OK")
</pallas_src>

<mosaic_0001>
module attributes {stable_mosaic.version = 11 : i64} {
  func.func @_gc_kernel(%arg0: i32, %arg1: i32, %arg2: memref<128x128xbf16, #tpu.memory_space<vmem>>, %arg3: memref<128x128xbf16, #tpu.memory_space<vmem>>, %arg4: memref<128x128xf32, #tpu.memory_space<vmem>>, %arg5: memref<1x128xf32, #tpu.memory_space<vmem>>, %arg6: memref<128x1xf32, #tpu.memory_space<vmem>>, %arg7: memref<128x128xbf16, #tpu.memory_space<vmem>>, %arg8: memref<128x128xf32, #tpu.memory_space<vmem>>) attributes {dimension_semantics = [#tpu.dimension_semantics<parallel>, #tpu.dimension_semantics<arbitrary>], iteration_bounds = array<i64: 2, 2>, scalar_prefetch = 0 : i64, scratch_operands = 1 : i64, tpu.core_type = #tpu.core_type<tc>, window_params = [{transform_indices = @transform_0, window_bounds = array<i64: 128, 128>}, {transform_indices = @transform_1, window_bounds = array<i64: 128, 128>}, {pipeline_mode = #tpu.pipeline_mode<synchronous>, transform_indices = @transform_2, window_bounds = array<i64: 128, 128>}, {pipeline_mode = #tpu.pipeline_mode<synchronous>, transform_indices = @transform_3, window_bounds = array<i64: 1, 128>}, {transform_indices = @transform_4, window_bounds = array<i64: 128, 1>}, {transform_indices = @transform_5, window_bounds = array<i64: 128, 128>}]} {
    %c0_i32 = arith.constant 0 : i32
    %0 = arith.cmpi eq, %arg1, %c0_i32 : i32
    %1 = arith.extui %0 : i1 to i32
    %c0_i32_0 = arith.constant 0 : i32
    %2 = arith.cmpi ne, %1, %c0_i32_0 : i32
    scf.if %2 {
      %cst_10 = arith.constant 0.000000e+00 : f32
      %15 = vector.broadcast %cst_10 : f32 to vector<128x128xf32>
      %c0_11 = arith.constant 0 : index
      %c0_12 = arith.constant 0 : index
      %16 = vector.load %arg8[%c0_11, %c0_12] : memref<128x128xf32, #tpu.memory_space<vmem>>, vector<128x128xf32>
      tpu.vector_store %arg8[%c0_11, %c0_12], %15 {strides = array<i32>} : memref<128x128xf32, #tpu.memory_space<vmem>>, vector<128x128xf32>,
    } else {
    }
    %c0 = arith.constant 0 : index
    %c0_1 = arith.constant 0 : index
    %3 = vector.load %arg8[%c0, %c0_1] : memref<128x128xf32, #tpu.memory_space<vmem>>, vector<128x128xf32>
    %c0_2 = arith.constant 0 : index
    %c0_3 = arith.constant 0 : index
    %4 = vector.load %arg2[%c0_2, %c0_3] : memref<128x128xbf16, #tpu.memory_space<vmem>>, vector<128x128xbf16>
    %c0_4 = arith.constant 0 : index
    %c0_5 = arith.constant 0 : index
    %5 = vector.load %arg3[%c0_4, %c0_5] : memref<128x128xbf16, #tpu.memory_space<vmem>>, vector<128x128xbf16>
    %cst = arith.constant dense<0.000000e+00> : vector<128x128xf32>
    %6 = tpu.matmul %4, %5, %cst {dimension_numbers = #tpu.dot_dimension_numbers<[1], [0], [0], [1], [0, 0, 1, 1], [], []>} : vector<128x128xbf16>, vector<128x128xbf16>, vector<128x128xf32> -> vector<128x128xf32>
    %7 = arith.addf %3, %6 : vector<128x128xf32>
    %c0_6 = arith.constant 0 : index
    %c0_7 = arith.constant 0 : index
    %8 = vector.load %arg8[%c0_6, %c0_7] : memref<128x128xf32, #tpu.memory_space<vmem>>, vector<128x128xf32>
    tpu.vector_store %arg8[%c0_6, %c0_7], %7 {strides = array<i32>} : memref<128x128xf32, #tpu.memory_space<vmem>>, vector<128x128xf32>,
    %9 = arith.cmpi eq, %arg1, %arg0 : i32
    %10 = arith.extui %9 : i1 to i32
    %c0_i32_8 = arith.constant 0 : i32
    %11 = arith.cmpi ne, %10, %c0_i32_8 : i32
    scf.if %11 {
      %c0_10 = arith.constant 0 : index
      %c0_11 = arith.constant 0 : index
      %15 = vector.load %arg8[%c0_10, %c0_11] : memref<128x128xf32, #tpu.memory_space<vmem>>, vector<128x128xf32>
      %c0_12 = arith.constant 0 : index
      %c0_13 = arith.constant 0 : index
      %16 = vector.load %arg3[%c0_12, %c0_13] : memref<128x128xbf16, #tpu.memory_space<vmem>>, vector<128x128xbf16>
      %17 = arith.extf %16 : vector<128x128xbf16> to vector<128x128xf32>
      %18 = arith.addf %15, %17 : vector<128x128xf32>
      %c0_14 = arith.constant 0 : index
      %c0_15 = arith.constant 0 : index
      %19 = vector.load %arg8[%c0_14, %c0_15] : memref<128x128xf32, #tpu.memory_space<vmem>>, vector<128x128xf32>
      tpu.vector_store %arg8[%c0_14, %c0_15], %18 {strides = array<i32>} : memref<128x128xf32, #tpu.memory_space<vmem>>, vector<128x128xf32>,
    } else {
    }
    %c1_i32 = arith.constant 1 : i32
    %12 = arith.cmpi eq, %arg1, %c1_i32 : i32
    %13 = arith.extui %12 : i1 to i32
    %c0_i32_9 = arith.constant 0 : i32
    %14 = arith.cmpi ne, %13, %c0_i32_9 : i32
    scf.if %14 {
      %c0_10 = arith.constant 0 : index
      %c0_11 = arith.constant 0 : index
      %15 = vector.load %arg8[%c0_10, %c0_11] : memref<128x128xf32, #tpu.memory_space<vmem>>, vector<128x128xf32>
      %c0_12 = arith.constant 0 : index
      %c0_13 = arith.constant 0 : index
      %16 = vector.load %arg4[%c0_12, %c0_13] : memref<128x128xf32, #tpu.memory_space<vmem>>, vector<128x128xf32>
      %cst_14 = arith.constant dense<0.000000e+00> : vector<128x128xf32>
      %17 = tpu.matmul %15, %16, %cst_14 {dimension_numbers = #tpu.dot_dimension_numbers<[1], [0], [0], [1], [0, 0, 1, 1], [], []>} : vector<128x128xf32>, vector<128x128xf32>, vector<128x128xf32> -> vector<128x128xf32>
      %c0_15 = arith.constant 0 : index
      %c0_16 = arith.constant 0 : index
      %18 = vector.load %arg6[%c0_15, %c0_16] : memref<128x1xf32, #tpu.memory_space<vmem>>, vector<128x1xf32>
      %c0_17 = arith.constant 0 : index
      %c0_18 = arith.constant 0 : index
      %19 = vector.load %arg5[%c0_17, %c0_18] : memref<1x128xf32, #tpu.memory_space<vmem>>, vector<1x128xf32>
      %20 = vector.broadcast %18 : vector<128x1xf32> to vector<128x128xf32>
      %21 = vector.broadcast %19 : vector<1x128xf32> to vector<128x128xf32>
      %22 = arith.mulf %20, %21 : vector<128x128xf32>
      %23 = arith.addf %17, %22 : vector<128x128xf32>
      %cst_19 = arith.constant 0.000000e+00 : f32
      %24 = vector.broadcast %cst_19 : f32 to vector<128x128xf32>
      %25 = arith.maximumf %23, %24 : vector<128x128xf32>
      %26 = arith.truncf %25 : vector<128x128xf32> to vector<128x128xbf16>
      %c0_20 = arith.constant 0 : index
      %c0_21 = arith.constant 0 : index
      %27 = vector.load %arg7[%c0_20, %c0_21] : memref<128x128xbf16, #tpu.memory_space<vmem>>, vector<128x128xbf16>
      tpu.vector_store %arg7[%c0_20, %c0_21], %26 {strides = array<i32>} : memref<128x128xbf16, #tpu.memory_space<vmem>>, vector<128x128xbf16>,
    } else {
    }
    return
  }
  func.func @transform_0(%arg0: i32, %arg1: i32) -> (i32, i32) {
    %c0_i32 = arith.constant 0 : i32
    return %arg0, %arg1 : i32, i32
  }
  func.func @transform_1(%arg0: i32, %arg1: i32) -> (i32, i32) {
    %c0_i32 = arith.constant 0 : i32
    %c0_i32_0 = arith.constant 0 : i32
    return %arg1, %c0_i32 : i32, i32
  }
  func.func @transform_2(%arg0: i32, %arg1: i32) -> (i32, i32) {
    %c0_i32 = arith.constant 0 : i32
    %c0_i32_0 = arith.constant 0 : i32
    %c0_i32_1 = arith.constant 0 : i32
    return %c0_i32, %c0_i32_0 : i32, i32
  }
  func.func @transform_3(%arg0: i32, %arg1: i32) -> (i32, i32) {
    %c0_i32 = arith.constant 0 : i32
    %c0_i32_0 = arith.constant 0 : i32
    %c0_i32_1 = arith.constant 0 : i32
    return %c0_i32, %c0_i32_0 : i32, i32
  }
  func.func @transform_4(%arg0: i32, %arg1: i32) -> (i32, i32) {
    %c0_i32 = arith.constant 0 : i32
    %c0_i32_0 = arith.constant 0 : i32
    return %arg0, %c0_i32 : i32, i32
  }
  func.func @transform_5(%arg0: i32, %arg1: i32) -> (i32, i32) {
    %c0_i32 = arith.constant 0 : i32
    %c0_i32_0 = arith.constant 0 : i32
    return %arg0, %c0_i32 : i32, i32
  }
}

module attributes {stable_mosaic.version = 11 : i64} {
  func.func @_gc_kernel(%arg0: i32, %arg1: i32, %arg2: memref<128x128xbf16, #tpu.memory_space<vmem>>, %arg3: memref<128x128xbf16, #tpu.memory_space<vmem>>, %arg4: memref<128x128xf32, #tpu.memory_space<vmem>>, %arg5: memref<1x128xf32, #tpu.memory_space<vmem>>, %arg6: memref<128x1xf32, #tpu.memory_space<vmem>>, %arg7: memref<128x128xf32, #tpu.memory_space<vmem>>, %arg8: memref<128x128xf32, #tpu.memory_space<vmem>>) attributes {dimension_semantics = [#tpu.dimension_semantics<parallel>, #tpu.dimension_semantics<arbitrary>], iteration_bounds = array<i64: 2, 2>, scalar_prefetch = 0 : i64, scratch_operands = 1 : i64, tpu.core_type = #tpu.core_type<tc>, window_params = [{transform_indices = @transform_0, window_bounds = array<i64: 128, 128>}, {transform_indices = @transform_1, window_bounds = array<i64: 128, 128>}, {pipeline_mode = #tpu.pipeline_mode<synchronous>, transform_indices = @transform_2, window_bounds = array<i64: 128, 128>}, {pipeline_mode = #tpu.pipeline_mode<synchronous>, transform_indices = @transform_3, window_bounds = array<i64: 1, 128>}, {transform_indices = @transform_4, window_bounds = array<i64: 128, 1>}, {transform_indices = @transform_5, window_bounds = array<i64: 128, 128>}]} {
    %c0_i32 = arith.constant 0 : i32
    %0 = arith.cmpi eq, %arg1, %c0_i32 : i32
    %1 = arith.extui %0 : i1 to i32
    %c0_i32_0 = arith.constant 0 : i32
    %2 = arith.cmpi ne, %1, %c0_i32_0 : i32
    scf.if %2 {
      %cst_10 = arith.constant 0.000000e+00 : f32
      %15 = vector.broadcast %cst_10 : f32 to vector<128x128xf32>
      %c0_11 = arith.constant 0 : index
      %c0_12 = arith.constant 0 : index
      %16 = vector.load %arg8[%c0_11, %c0_12] : memref<128x128xf32, #tpu.memory_space<vmem>>, vector<128x128xf32>
      tpu.vector_store %arg8[%c0_11, %c0_12], %15 {strides = array<i32>} : memref<128x128xf32, #tpu.memory_space<vmem>>, vector<128x128xf32>,
    } else {
    }
    %c0 = arith.constant 0 : index
    %c0_1 = arith.constant 0 : index
    %3 = vector.load %arg8[%c0, %c0_1] : memref<128x128xf32, #tpu.memory_space<vmem>>, vector<128x128xf32>
    %c0_2 = arith.constant 0 : index
    %c0_3 = arith.constant 0 : index
    %4 = vector.load %arg2[%c0_2, %c0_3] : memref<128x128xbf16, #tpu.memory_space<vmem>>, vector<128x128xbf16>
    %c0_4 = arith.constant 0 : index
    %c0_5 = arith.constant 0 : index
    %5 = vector.load %arg3[%c0_4, %c0_5] : memref<128x128xbf16, #tpu.memory_space<vmem>>, vector<128x128xbf16>
    %cst = arith.constant dense<0.000000e+00> : vector<128x128xf32>
    %6 = tpu.matmul %4, %5, %cst {dimension_numbers = #tpu.dot_dimension_numbers<[1], [0], [0], [1], [0, 0, 1, 1], [], []>} : vector<128x128xbf16>, vector<128x128xbf16>, vector<128x128xf32> -> vector<128x128xf32>
    %7 = arith.addf %3, %6 : vector<128x128xf32>
    %c0_6 = arith.constant 0 : index
    %c0_7 = arith.constant 0 : index
    %8 = vector.load %arg8[%c0_6, %c0_7] : memref<128x128xf32, #tpu.memory_space<vmem>>, vector<128x128xf32>
    tpu.vector_store %arg8[%c0_6, %c0_7], %7 {strides = array<i32>} : memref<128x128xf32, #tpu.memory_space<vmem>>, vector<128x128xf32>,
    %9 = arith.cmpi eq, %arg1, %arg0 : i32
    %10 = arith.extui %9 : i1 to i32
    %c0_i32_8 = arith.constant 0 : i32
    %11 = arith.cmpi ne, %10, %c0_i32_8 : i32
    scf.if %11 {
      %c0_10 = arith.constant 0 : index
      %c0_11 = arith.constant 0 : index
      %15 = vector.load %arg8[%c0_10, %c0_11] : memref<128x128xf32, #tpu.memory_space<vmem>>, vector<128x128xf32>
      %c0_12 = arith.constant 0 : index
      %c0_13 = arith.constant 0 : index
      %16 = vector.load %arg3[%c0_12, %c0_13] : memref<128x128xbf16, #tpu.memory_space<vmem>>, vector<128x128xbf16>
      %17 = arith.extf %16 : vector<128x128xbf16> to vector<128x128xf32>
      %18 = arith.addf %15, %17 : vector<128x128xf32>
      %c0_14 = arith.constant 0 : index
      %c0_15 = arith.constant 0 : index
      %19 = vector.load %arg8[%c0_14, %c0_15] : memref<128x128xf32, #tpu.memory_space<vmem>>, vector<128x128xf32>
      tpu.vector_store %arg8[%c0_14, %c0_15], %18 {strides = array<i32>} : memref<128x128xf32, #tpu.memory_space<vmem>>, vector<128x128xf32>,
    } else {
    }
    %c1_i32 = arith.constant 1 : i32
    %12 = arith.cmpi eq, %arg1, %c1_i32 : i32
    %13 = arith.extui %12 : i1 to i32
    %c0_i32_9 = arith.constant 0 : i32
    %14 = arith.cmpi ne, %13, %c0_i32_9 : i32
    scf.if %14 {
      %c0_10 = arith.constant 0 : index
      %c0_11 = arith.constant 0 : index
      %15 = vector.load %arg8[%c0_10, %c0_11] : memref<128x128xf32, #tpu.memory_space<vmem>>, vector<128x128xf32>
      %c0_12 = arith.constant 0 : index
      %c0_13 = arith.constant 0 : index
      %16 = vector.load %arg4[%c0_12, %c0_13] : memref<128x128xf32, #tpu.memory_space<vmem>>, vector<128x128xf32>
      %cst_14 = arith.constant dense<0.000000e+00> : vector<128x128xf32>
      %17 = tpu.matmul %15, %16, %cst_14 {dimension_numbers = #tpu.dot_dimension_numbers<[1], [0], [0], [1], [0, 0, 1, 1], [], []>} : vector<128x128xf32>, vector<128x128xf32>, vector<128x128xf32> -> vector<128x128xf32>
      %c0_15 = arith.constant 0 : index
      %c0_16 = arith.constant 0 : index
      %18 = vector.load %arg6[%c0_15, %c0_16] : memref<128x1xf32, #tpu.memory_space<vmem>>, vector<128x1xf32>
      %c0_17 = arith.constant 0 : index
      %c0_18 = arith.constant 0 : index
      %19 = vector.load %arg5[%c0_17, %c0_18] : memref<1x128xf32, #tpu.memory_space<vmem>>, vector<1x128xf32>
      %20 = vector.broadcast %18 : vector<128x1xf32> to vector<128x128xf32>
      %21 = vector.broadcast %19 : vector<1x128xf32> to vector<128x128xf32>
      %22 = arith.mulf %20, %21 : vector<128x128xf32>
      %23 = arith.addf %17, %22 : vector<128x128xf32>
      %c0_19 = arith.constant 0 : index
      %c0_20 = arith.constant 0 : index
      %24 = vector.load %arg7[%c0_19, %c0_20] : memref<128x128xf32, #tpu.memory_space<vmem>>, vector<128x128xf32>
      tpu.vector_store %arg7[%c0_19, %c0_20], %23 {strides = array<i32>} : memref<128x128xf32, #tpu.memory_space<vmem>>, vector<128x128xf32>,
    } else {
    }
    return
  }
  func.func @transform_0(%arg0: i32, %arg1: i32) -> (i32, i32) {
    %c0_i32 = arith.constant 0 : i32
    return %arg0, %arg1 : i32, i32
  }
  func.func @transform_1(%arg0: i32, %arg1: i32) -> (i32, i32) {
    %c0_i32 = arith.constant 0 : i32
    %c0_i32_0 = arith.constant 0 : i32
    return %arg1, %c0_i32 : i32, i32
  }
  func.func @transform_2(%arg0: i32, %arg1: i32) -> (i32, i32) {
    %c0_i32 = arith.constant 0 : i32
    %c0_i32_0 = arith.constant 0 : i32
    %c0_i32_1 = arith.constant 0 : i32
    return %c0_i32, %c0_i32_0 : i32, i32
  }
  func.func @transform_3(%arg0: i32, %arg1: i32) -> (i32, i32) {
    %c0_i32 = arith.constant 0 : i32
    %c0_i32_0 = arith.constant 0 : i32
    %c0_i32_1 = arith.constant 0 : i32
    return %c0_i32, %c0_i32_0 : i32, i32
  }
  func.func @transform_4(%arg0: i32, %arg1: i32) -> (i32, i32) {
    %c0_i32 = arith.constant 0 : i32
    %c0_i32_0 = arith.constant 0 : i32
    return %arg0, %c0_i32 : i32, i32
  }
  func.func @transform_5(%arg0: i32, %arg1: i32) -> (i32, i32) {
    %c0_i32 = arith.constant 0 : i32
    %c0_i32_0 = arith.constant 0 : i32
    return %arg0, %c0_i32 : i32, i32
  }
}

module attributes {stable_mosaic.version = 11 : i64} {
  func.func @_ce_kernel(%arg0: i32, %arg1: memref<128x128xf32, #tpu.memory_space<vmem>>, %arg2: memref<128x1xi32, #tpu.memory_space<vmem>>, %arg3: memref<128x1xf32, #tpu.memory_space<vmem>>, %arg4: memref<1x1xf32, #tpu.memory_space<vmem>>) attributes {dimension_semantics = [#tpu.dimension_semantics<arbitrary>], iteration_bounds = array<i64: 2>, scalar_prefetch = 0 : i64, scratch_operands = 0 : i64, tpu.core_type = #tpu.core_type<tc>, window_params = [{transform_indices = @transform_0, window_bounds = array<i64: 128, 128>}, {transform_indices = @transform_1, window_bounds = array<i64: 128, 1>}, {transform_indices = @transform_2, window_bounds = array<i64: 128, 1>}, {pipeline_mode = #tpu.pipeline_mode<synchronous>, transform_indices = @transform_3, window_bounds = array<i64: 1, 1>}]} {
    %c0_i32 = arith.constant 0 : i32
    %0 = arith.cmpi eq, %arg0, %c0_i32 : i32
    %1 = arith.extui %0 : i1 to i32
    %c0_i32_0 = arith.constant 0 : i32
    %2 = arith.cmpi ne, %1, %c0_i32_0 : i32
    scf.if %2 {
      %cst_15 = arith.constant 0.000000e+00 : f32
      %36 = vector.broadcast %cst_15 : f32 to vector<1x1xf32>
      %c0_16 = arith.constant 0 : index
      %c0_17 = arith.constant 0 : index
      %37 = vector.load %arg4[%c0_16, %c0_17] : memref<1x1xf32, #tpu.memory_space<vmem>>, vector<1x1xf32>
      tpu.vector_store %arg4[%c0_16, %c0_17], %36 {strides = array<i32>} : memref<1x1xf32, #tpu.memory_space<vmem>>, vector<1x1xf32>,
    } else {
    }
    %c0 = arith.constant 0 : index
    %c0_1 = arith.constant 0 : index
    %3 = vector.load %arg1[%c0, %c0_1] : memref<128x128xf32, #tpu.memory_space<vmem>>, vector<128x128xf32>
    %4 = tpu.iota {dimensions = array<i32: 1>} : vector<128x128xi32>
    %c8_i32 = arith.constant 8 : i32
    %5 = vector.broadcast %c8_i32 : i32 to vector<128x128xi32>
    %6 = arith.cmpi slt, %4, %5 : vector<128x128xi32>
    %cst = arith.constant -1.000000e+30 : f32
    %7 = vector.broadcast %cst : f32 to vector<128x128xf32>
    %8 = arith.select %6, %3, %7 : vector<128x128xi1>, vector<128x128xf32>
    %cst_2 = arith.constant dense<0xFF800000> : vector<128xf32>
    %9 = vector.multi_reduction <maximumf>, %8, %cst_2 [1] : vector<128x128xf32> to vector<128xf32>
    %10 = vector.shape_cast %9 : vector<128xf32> to vector<128x1xf32>
    %11 = vector.broadcast %10 : vector<128x1xf32> to vector<128x128xf32>
    %12 = arith.subf %8, %11 : vector<128x128xf32>
    %13 = math.exp %12 : vector<128x128xf32>
    %cst_3 = arith.constant dense<0.000000e+00> : vector<128xf32>
    %14 = vector.multi_reduction <add>, %13, %cst_3 [1] : vector<128x128xf32> to vector<128xf32>
    %15 = vector.shape_cast %14 : vector<128xf32> to vector<128x1xf32>
    %16 = math.log %15 : vector<128x1xf32>
    %17 = arith.addf %10, %16 : vector<128x1xf32>
    %c0_4 = arith.constant 0 : index
    %c0_5 = arith.constant 0 : index
    %18 = vector.load %arg2[%c0_4, %c0_5] : memref<128x1xi32, #tpu.memory_space<vmem>>, vector<128x1xi32>
    %19 = vector.broadcast %18 : vector<128x1xi32> to vector<128x128xi32>
    %20 = arith.cmpi eq, %4, %19 : vector<128x128xi32>
    %cst_6 = arith.constant 0.000000e+00 : f32
    %21 = vector.broadcast %cst_6 : f32 to vector<128x128xf32>
    %22 = arith.select %20, %3, %21 : vector<128x128xi1>, vector<128x128xf32>
    %cst_7 = arith.constant dense<0.000000e+00> : vector<128xf32>
    %23 = vector.multi_reduction <add>, %22, %cst_7 [1] : vector<128x128xf32> to vector<128xf32>
    %24 = vector.shape_cast %23 : vector<128xf32> to vector<128x1xf32>
    %c0_8 = arith.constant 0 : index
    %c0_9 = arith.constant 0 : index
    %25 = vector.load %arg3[%c0_8, %c0_9] : memref<128x1xf32, #tpu.memory_space<vmem>>, vector<128x1xf32>
    %26 = arith.subf %17, %24 : vector<128x1xf32>
    %27 = arith.mulf %25, %26 : vector<128x1xf32>
    %c0_10 = arith.constant 0 : index
    %c0_11 = arith.constant 0 : index
    %28 = vector.load %arg4[%c0_10, %c0_11] : memref<1x1xf32, #tpu.memory_space<vmem>>, vector<1x1xf32>
    %29 = vector.shape_cast %27 : vector<128x1xf32> to vector<1x128x1xf32>
    %cst_12 = arith.constant dense<0.000000e+00> : vector<1xf32>
    %30 = vector.multi_reduction <add>, %29, %cst_12 [1, 2] : vector<1x128x1xf32> to vector<1xf32>
    %31 = vector.shape_cast %30 : vector<1xf32> to vector<1x1x1xf32>
    %32 = vector.extract %31[0, 0, 0] : f32 from vector<1x1x1xf32>
    %33 = vector.broadcast %32 : f32 to vector<1x1xf32>
    %34 = arith.addf %28, %33 : vector<1x1xf32>
    %c0_13 = arith.constant 0 : index
    %c0_14 = arith.constant 0 : index
    %35 = vector.load %arg4[%c0_13, %c0_14] : memref<1x1xf32, #tpu.memory_space<vmem>>, vector<1x1xf32>
    tpu.vector_store %arg4[%c0_13, %c0_14], %34 {strides = array<i32>} : memref<1x1xf32, #tpu.memory_space<vmem>>, vector<1x1xf32>,
    return
  }
  func.func @transform_0(%arg0: i32) -> (i32, i32) {
    %c0_i32 = arith.constant 0 : i32
    %c0_i32_0 = arith.constant 0 : i32
    return %arg0, %c0_i32 : i32, i32
  }
  func.func @transform_1(%arg0: i32) -> (i32, i32) {
    %c0_i32 = arith.constant 0 : i32
    %c0_i32_0 = arith.constant 0 : i32
    return %arg0, %c0_i32 : i32, i32
  }
  func.func @transform_2(%arg0: i32) -> (i32, i32) {
    %c0_i32 = arith.constant 0 : i32
    %c0_i32_0 = arith.constant 0 : i32
    return %arg0, %c0_i32 : i32, i32
  }
  func.func @transform_3(%arg0: i32) -> (i32, i32) {
    %c0_i32 = arith.constant 0 : i32
    %c0_i32_0 = arith.constant 0 : i32
    %c0_i32_1 = arith.constant 0 : i32
    return %c0_i32, %c0_i32_0 : i32, i32
  }
}

</mosaic_0001>

<bundles_post_ra>
// kernel: gcn_forward.7
= control target key start
LH: loop header
LB: loop body
LE: loop exit
PB: predicated region body
PF: predicated region fallthrough
CT: control target
= control target key end

     0   :  { %8 = vsyncpa [#allocation3], 0  ;;  %s855_s12 = smov 0   ;;  %s1204_s0 = inlined_call_operand.vmem [shape: f32[256,128], index: 0, kind: input, shape index: {}]   ;;  %s1205_s1 = inlined_call_operand.vmem [shape: s32[256,1], index: 1, kind: input, shape index: {}]   ;;  %s1206_s2 = inlined_call_operand.vmem [shape: f32[256,1], index: 2, kind: input, shape index: {}]   ;;  %s1207_s3 = inlined_call_operand.hbm [shape: f32[1,1], index: 3, kind: output, shape index: {}]  }
   0x1 LB: > { %s861_s13 = sadd.s32 4294967295, %s830_s12   ;;  %p699_p0 = scmp.ge.s32.totalorder %s830_s12, 1  ;;  %s830_s12 = sphi %s855_s12, %s14_s12  }
   0x2   : > { %p156_p1 = scmp.lt.s32.totalorder %s830_s12, 3 }
   0x4   : > { %p157_p2 = pnand %p699_p0, %p156_p1 }
   0x5   : > { %s700_s14 = sshll.u32 (!%p157_p2), %s861_s13, 4  ;;  %p706_p4 = scmp.ne.s32.totalorder (!%p157_p2), %s861_s13, 0 }
   0x6   : > { %160 = sbr.rel (%p157_p2) target bundleno = 613 (0x265), region = 32  ;;  %p186_p3 = scmp.lt.s32.totalorder (!%p157_p2), %s700_s14, 31 }
   0xb   : > { %s1209_s14 = smov (!%p186_p3, %s700_s14), 31  ;;  %206 = sbr.rel (%p706_p4) target bundleno = 18 (0x12), region = 36 }
   0xc   : > { %s701_s15 = sshll.u32 %s1209_s14, 3 }
   0xd   : > { %s869_s18 = scalar_lea.vmem %s1204_s0, %s701_s15  ;;  %s874_s21 = scalar_lea.vmem %s1205_s1, %s701_s15 }
   0xe   : > { %s879_s24 = scalar_lea.vmem %s1206_s2, %s701_s15 }
  0x10   : > { %vm207_vm0 = vcmask 0   ;;  %v832_v0 = vmov 0.0  }
  0x11   : > { %208 = vst.msk [vmem:[#allocation2] sm:$0x1] %vm207_vm0, %v832_v0 }
  0x12 PF: > { %v225_v1 = vlaneseq  ;;  %v833_v2 = vmov 0   ;;  %v883_v3 = vld [vmem:[%s869_s18 + $0x10] sm:$0xff]  ;;  %v888_v5 = vld [vmem:[%s869_s18] sm:$0xff]  ;;  %v892_v6 = vld [vmem:[%s869_s18 + $0x18] sm:$0xff]  ;;  %s834_s25 = smov [#allocation2]   ;;  %p717_p5 = scmp.eq.s32.totalorder %s861_s13, 1 }
  0x13   : > { %731 = vset.pattern.permute.xlu1 %v833_v2  ;;  %730 = vset.pattern.permute.xlu0 %v833_v2  ;;  %v895_v7 = vld [vmem:[%s869_s18 + $0x8] sm:$0xff]  ;;  %v923_v13 = vld [vmem:[%s869_s18 + $0x20] sm:$0xff]  ;;  %v938_v16 = vld [vmem:[%s869_s18 + $0x38] sm:$0xff]  ;;  %s633_s26 = sshll.u32 %s834_s25, 4  ;;  %s634_s26 = int_to_ptr.vmem [resolvable:$true] %s633_s26 }
  0x14   : > { %v885_v4 = vand.u32 127, %v225_v1  ;;  %v920_v12 = vld [vmem:[%s869_s18 + $0x28] sm:$0xff]  ;;  %v941_v17 = vld [vmem:[%s869_s18 + $0x30] sm:$0xff]  ;;  %v959_v21 = vld [vmem:[%s869_s18 + $0x40] sm:$0xff]  ;;  %s796_s28 = scalar_lea.vmem %s634_s26, 16  ;;  %s802_s29 = scalar_lea.vmem %s634_s26, 32 }
  0x15   : > { %v956_v20 = vld [vmem:[%s869_s18 + $0x48] sm:$0xff]  ;;  %v974_v24 = vld [vmem:[%s869_s18 + $0x58] sm:$0xff]  ;;  %v977_v25 = vld [vmem:[%s869_s18 + $0x50] sm:$0xff]  ;;  %p797_p6 = scmp.ne.s32.totalorder %s634_s26, %s796_s28  ;;  %p803_p9 = scmp.lt.s32.totalorder %s634_s26, %s634_s26 }
  0x16   : > { %vm227_vm1 = vcmp.lt.s32.totalorder %v885_v4, 8  ;;  %v992_v28 = vld [vmem:[%s869_s18 + $0x68] sm:$0xff]  ;;  %v995_v29 = vld [vmem:[%s869_s18 + $0x60] sm:$0xff]  ;;  %v1010_v32 = vld [vmem:[%s869_s18 + $0x78] sm:$0xff]  ;;  %p804_p10 = scmp.lt.s32.totalorder %s802_s29, %s796_s28 }
  0x17   : > { %v900_v8 = vsel %vm227_vm1, %v883_v3, -1e+30  ;;  %v905_v9 = vsel %vm227_vm1, %v888_v5, -1e+30  ;;  %v912_v10 = vsel %vm227_vm1, %v892_v6, -1e+30  ;;  %p798_p7 = pnand %p797_p6, %p717_p5 }
  0x18   : > { %248 = vmax.xlane.f32.xlu1 %v900_v8  ;;  %244 = vmax.xlane.f32.xlu0 %v905_v9  ;;  %v917_v11 = vsel %vm227_vm1, %v895_v7, -1e+30  ;;  %v930_v14 = vsel %vm227_vm1, %v920_v12, -1e+30  ;;  %v935_v15 = vsel %vm227_vm1, %v923_v13, -1e+30  ;;  %p805_p11 = por %p804_p10, %p803_p9 }
  0x19   : > { %v948_v18 = vsel %vm227_vm1, %v938_v16, -1e+30  ;;  %v953_v19 = vsel %vm227_vm1, %v941_v17, -1e+30  ;;  %v966_v22 = vsel %vm227_vm1, %v956_v20, -1e+30  ;;  %p799_p8 = pneg %p798_p7 }
  0x1a   : > { %v971_v23 = vsel %vm227_vm1, %v959_v21, -1e+30  ;;  %v984_v26 = vsel %vm227_vm1, %v974_v24, -1e+30  ;;  %v989_v27 = vsel %vm227_vm1, %v977_v25, -1e+30 }
  0x1b   : > { %v1002_v30 = vsel %vm227_vm1, %v992_v28, -1e+30  ;;  %v1007_v31 = vsel %vm227_vm1, %v995_v29, -1e+30  ;;  %v1013_v33 = vld [vmem:[%s869_s18 + $0x70] sm:$0xff]  ;;  %v405_v36 = vld [vmem:[%s874_s21 + $0x8] sm:$0xff]  ;;  %p806_p12 = pnand %p805_p11, %p799_p8 }
  0x1c   : > { %250 = vmax.xlane.f32.xlu1 %v912_v10  ;;  %246 = vmax.xlane.f32.xlu0 %v917_v11  ;;  %v1020_v34 = vsel %vm227_vm1, %v1010_v32, -1e+30  ;;  %v1025_v35 = vsel %vm227_vm1, %v1013_v33, -1e+30  ;;  %v406_v37 = vld [vmem:[%s874_s21 + $0x10] sm:$0xff]  ;;  %v404_v38 = vld [vmem:[%s874_s21] sm:$0xff] }
  0x1d   : > { %v407_v39 = vld [vmem:[%s874_s21 + $0x18] sm:$0xff]  ;;  %v413_v40 = vld [vmem:[%s874_s21 + $0x48] sm:$0xff]  ;;  %v408_v41 = vld [vmem:[%s874_s21 + $0x20] sm:$0xff] }
  0x1e   : > { %v415_v42 = vld [vmem:[%s874_s21 + $0x58] sm:$0xff]  ;;  %v409_v43 = vld [vmem:[%s874_s21 + $0x28] sm:$0xff]  ;;  %v410_v45 = vld [vmem:[%s874_s21 + $0x30] sm:$0xff] }
  0x1f   : > { %v417_v44 = vld [vmem:[%s874_s21 + $0x68] sm:$0xff]  ;;  %v419_v46 = vld [vmem:[%s874_s21 + $0x78] sm:$0xff]  ;;  %v412_v48 = vld [vmem:[%s874_s21 + $0x40] sm:$0xff] }
  0x20   : > { %254 = vmax.xlane.f32.xlu1 %v930_v14  ;;  %252 = vmax.xlane.f32.xlu0 %v935_v15  ;;  %v411_v47 = vld [vmem:[%s874_s21 + $0x38] sm:$0xff]  ;;  %v414_v49 = vld [vmem:[%s874_s21 + $0x50] sm:$0xff]  ;;  %v416_v50 = vld [vmem:[%s874_s21 + $0x60] sm:$0xff] }
  0x21   : > { %v418_v51 = vld [vmem:[%s874_s21 + $0x70] sm:$0xff] }
  0x24   : > { %258 = vmax.xlane.f32.xlu1 %v948_v18  ;;  %256 = vmax.xlane.f32.xlu0 %v953_v19 }
  0x28   : > { %262 = vmax.xlane.f32.xlu1 %v966_v22  ;;  %260 = vmax.xlane.f32.xlu0 %v971_v23 }
  0x2c   : > { %266 = vmax.xlane.f32.xlu1 %v984_v26  ;;  %264 = vmax.xlane.f32.xlu0 %v989_v27 }
  0x30   : > { %270 = vmax.xlane.f32.xlu1 %v1002_v30  ;;  %268 = vmax.xlane.f32.xlu0 %v1007_v31 }
  0x34   : > { %274 = vmax.xlane.f32.xlu1 %v1020_v34  ;;  %272 = vmax.xlane.f32.xlu0 %v1025_v35 }
  0x45   : > { %424 = vperm.xlu1 %731, %v405_v36  }
  0x49   : > { %427 = vperm.xlu1 %731, %v406_v37  }
  0x4a   : > { %421 = vperm.xlu0 %730, %v404_v38  }
  0x4d   : > { %430 = vperm.xlu1 %731, %v407_v39  }
  0x4e   : > { %448 = vperm.xlu0 %730, %v413_v40  }
  0x51   : > { %433 = vperm.xlu1 %731, %v408_v41  }
  0x52   : > { %454 = vperm.xlu0 %730, %v415_v42  }
  0x55   : > { %436 = vperm.xlu1 %731, %v409_v43  }
  0x56   : > { %460 = vperm.xlu0 %730, %v417_v44  }
  0x59   : > { %439 = vperm.xlu1 %731, %v410_v45  }
  0x5a   : > { %466 = vperm.xlu0 %730, %v419_v46  }
  0x5d   : > { %442 = vperm.xlu1 %731, %v411_v47  }
  0x61   : > { %445 = vperm.xlu1 %731, %v412_v48  }
  0x65   : > { %451 = vperm.xlu1 %731, %v414_v49  }
  0x69   : > { %457 = vperm.xlu1 %731, %v416_v50  }
  0x6d   : > { %463 = vperm.xlu1 %731, %v418_v51  }
  0xa1   : > { %v1045_v52 = vpop.xlane.xlu1 %248  ;;  %v1047_v53 = vpop.xlane.xlu0 %244 }
  0xa2   : > { %v276_v0 = vsub.f32 %v905_v9, %v1047_v53  ;;  %v278_v39 = vsub.f32 %v900_v8, %v1045_v52 }
  0xa4   : > { %v292_v36 = vmul.f32 1.442695, %v276_v0 }
  0xa5   : > { %v1049_v54 = vpop.xlane.xlu1 %250  ;;  %v1051_v55 = vpop.xlane.xlu0 %246 }
  0xa6   : > { %v279_v1 = vsub.f32 %v912_v10, %v1049_v54  ;;  %v277_v37 = vsub.f32 %v917_v11, %v1051_v55  ;;  %732 = vpow2.f32 %v292_v36  ;;  %v296_v10 = vmul.f32 1.442695, %v278_v39 }
  0xa8   : > { %v298_v40 = vmul.f32 1.442695, %v279_v1  ;;  %v294_v9 = vmul.f32 1.442695, %v277_v37 }
  0xa9   : > { %v1053_v56 = vpop.xlane.xlu1 %254  ;;  %v1055_v57 = vpop.xlane.xlu0 %252 }
  0xaa   : > { %v281_v41 = vsub.f32 %v930_v14, %v1053_v56  ;;  %734 = vpow2.f32 %v298_v40  ;;  %v280_v44 = vsub.f32 %v935_v15, %v1055_v57 }
  0xab   : > { %736 = vpow2.f32 %v294_v9 }
  0xac   : > { %v302_v43 = vmul.f32 1.442695, %v281_v41  ;;  %738 = vpow2.f32 %v296_v10  ;;  %v300_v46 = vmul.f32 1.442695, %v280_v44 }
  0xad   : > { %v1057_v58 = vpop.xlane.xlu1 %258  ;;  %v1059_v59 = vpop.xlane.xlu0 %256 }
  0xae   : > { %v283_v8 = vsub.f32 %v948_v18, %v1057_v58  ;;  %740 = vpow2.f32 %v302_v43  ;;  %v282_v47 = vsub.f32 %v953_v19, %v1059_v59 }
  0xaf   : > { %742 = vpow2.f32 %v300_v46 }
  0xb0   : > { %v306_v49 = vmul.f32 1.442695, %v283_v8  ;;  %v304_v51 = vmul.f32 1.442695, %v282_v47 }
  0xb1   : > { %v1061_v60 = vpop.xlane.xlu1 %262  ;;  %v1063_v61 = vpop.xlane.xlu0 %260 }
  0xb2   : > { %v285_v50 = vsub.f32 %v966_v22, %v1061_v60  ;;  %v284_v19 = vsub.f32 %v971_v23, %v1063_v61  ;;  %744 = vpow2.f32 %v306_v49 }
  0xb3   : > { %v733_v36 = vpop.eup %732  ;;  %746 = vpow2.f32 %v304_v51 }
  0xb4   : > { %v310_v1 = vmul.f32 1.442695, %v285_v50 }
  0xb5   : > { %v1065_v62 = vpop.xlane.xlu1 %266  ;;  %v1067_v63 = vpop.xlane.xlu0 %264 }
  0xb6   : > { %v287_v22 = vsub.f32 %v984_v26, %v1065_v62  ;;  %v286_v37 = vsub.f32 %v989_v27, %v1067_v63  ;;  %748 = vpow2.f32 %v310_v1 }
  0xb7   : > { %v735_v39 = vpop.eup %734 }
  0xb8   : > { %v314_v23 = vmul.f32 1.442695, %v287_v22  ;;  %v737_v41 = vpop.eup %736 }
  0xb9   : > { %v1073_v2 = vpop.xlane.xlu1 %270  ;;  %v1077_v38 = vpop.xlane.xlu0 %268 }
  0xba   : > { %v288_v40 = vsub.f32 %v1007_v31, %v1077_v38  ;;  %v739_v9 = vpop.eup %738  ;;  %v289_v43 = vsub.f32 %v1002_v30, %v1073_v2 }
  0xbb   : > { %v741_v10 = vpop.eup %740 }
  0xbc   : > { %v316_v44 = vmul.f32 1.442695, %v288_v40  ;;  %v318_v8 = vmul.f32 1.442695, %v289_v43 }
  0xbd   : > { %v1083_v42 = vpop.xlane.xlu1 %274  ;;  %v1087_v11 = vpop.xlane.xlu0 %272 }
  0xbe   : > { %v290_v31 = vsub.f32 %v1025_v35, %v1087_v11  ;;  %v291_v47 = vsub.f32 %v1020_v34, %v1083_v42 }
  0xc0   : > { %v320_v30 = vmul.f32 1.442695, %v290_v31  ;;  %v322_v50 = vmul.f32 1.442695, %v291_v47 }
  0xc1   : > { %v425_v45 = vpop.permute.xlu1 %424 }
  0xc2   : > { %vm469_vm2 = vcmp.eq.s32.totalorder %v885_v4, %v425_v45  ;;  %v743_v45 = vpop.eup %742 }
  0xc3   : > { %v485_v14 = vsel %vm469_vm2, %v895_v7, 0.0  ;;  %vm581_vm2 = vcmask 7168  }
  0xc4   : > { %502 = vadd.xlane.f32.xlu0 %v485_v14  ;;  %v745_v14 = vpop.eup %744 }
  0xc5   : > { %v428_v48 = vpop.permute.xlu1 %427  ;;  %v422_v15 = vpop.permute.xlu0 %421 }
  0xc6   : > { %vm470_vm3 = vcmp.eq.s32.totalorder %v885_v4, %v428_v48  ;;  %vm468_vm4 = vcmp.eq.s32.totalorder %v885_v4, %v422_v15  ;;  %v747_v46 = vpop.eup %746 }
  0xc7   : > { %v486_v18 = vsel %vm470_vm3, %v883_v3, 0.0  ;;  %v484_v7 = vsel %vm468_vm4, %v888_v5, 0.0  ;;  %v308_v5 = vmul.f32 1.442695, %v284_v19  ;;  %v749_v48 = vpop.eup %748  ;;  %vm624_vm3 = vcmask 0  }
  0xc8   : > { %504 = vadd.xlane.f32.xlu0 %v486_v18  ;;  %500 = vadd.xlane.f32.xlu1 %v484_v7 }
  0xc9   : > { %v431_v0 = vpop.permute.xlu1 %430  ;;  %750 = vpow2.f32 %v308_v5  ;;  %v449_v22 = vpop.permute.xlu0 %448 }
  0xca   : > { %vm471_vm5 = vcmp.eq.s32.totalorder %v885_v4, %v431_v0  ;;  %752 = vpow2.f32 %v314_v23  ;;  %vm477_vm11 = vcmp.eq.s32.totalorder %v885_v4, %v449_v22 }
  0xcb   : > { %v487_v3 = vsel %vm471_vm5, %v892_v6, 0.0  ;;  %v312_v6 = vmul.f32 1.442695, %v286_v37 }
  0xcc   : > { %506 = vadd.xlane.f32.xlu0 %v487_v3  ;;  %324 = vadd.xlane.f32.xlu1 %v733_v36 }
  0xcd   : > { %v434_v26 = vpop.permute.xlu1 %433  ;;  %754 = vpow2.f32 %v312_v6 }
  0xce   : > { %756 = vpow2.f32 %v316_v44  ;;  %vm472_vm6 = vcmp.eq.s32.totalorder %v885_v4, %v434_v26 }
  0xcf   : > { %758 = vpow2.f32 %v318_v8  ;;  %v488_v0 = vsel %vm472_vm6, %v923_v13, 0.0  ;;  %v455_v13 = vpop.permute.xlu0 %454 }
  0xd0   : > { %326 = vadd.xlane.f32.xlu0 %v737_v41  ;;  %330 = vadd.xlane.f32.xlu1 %v735_v39  ;;  %760 = vpow2.f32 %v320_v30  ;;  %v493_v41 = vsel %vm477_vm11, %v956_v20, 0.0  ;;  %vm479_vm13 = vcmp.eq.s32.totalorder %v885_v4, %v455_v13 }
  0xd1   : > { %v437_v27 = vpop.permute.xlu1 %436  ;;  %762 = vpow2.f32 %v322_v50  ;;  %v495_v26 = vsel %vm479_vm13, %v974_v24, 0.0 }
  0xd2   : > { %vm473_vm7 = vcmp.eq.s32.totalorder %v885_v4, %v437_v27 }
  0xd3   : > { %v489_v36 = vsel %vm473_vm7, %v920_v12, 0.0  ;;  %v461_v40 = vpop.permute.xlu0 %460 }
  0xd4   : > { %328 = vadd.xlane.f32.xlu0 %v739_v9  ;;  %334 = vadd.xlane.f32.xlu1 %v741_v10  ;;  %vm481_vm15 = vcmp.eq.s32.totalorder %v885_v4, %v461_v40 }
  0xd5   : > { %v440_v15 = vpop.permute.xlu1 %439  ;;  %v497_v9 = vsel %vm481_vm15, %v992_v28, 0.0 }
  0xd6   : > { %v751_v49 = vpop.eup %750  ;;  %vm474_vm8 = vcmp.eq.s32.totalorder %v885_v4, %v440_v15 }
  0xd7   : > { %v753_v18 = vpop.eup %752  ;;  %v490_v37 = vsel %vm474_vm8, %v941_v17, 0.0 }
  0xd8   : > { %332 = vadd.xlane.f32.xlu0 %v743_v45  ;;  %338 = vadd.xlane.f32.xlu1 %v745_v14 }
  0xd9   : > { %v443_v35 = vpop.permute.xlu1 %442 }
  0xda   : > { %v755_v7 = vpop.eup %754  ;;  %vm475_vm9 = vcmp.eq.s32.totalorder %v885_v4, %v443_v35 }
  0xdb   : > { %v757_v51 = vpop.eup %756  ;;  %v491_v12 = vsel %vm475_vm9, %v938_v16, 0.0 }
  0xdc   : > { %336 = vadd.xlane.f32.xlu0 %v747_v46  ;;  %342 = vadd.xlane.f32.xlu1 %v749_v48  ;;  %v759_v34 = vpop.eup %758 }
  0xdd   : > { %v446_v19 = vpop.permute.xlu1 %445  ;;  %v761_v1 = vpop.eup %760 }
  0xde   : > { %v763_v5 = vpop.eup %762  ;;  %vm476_vm10 = vcmp.eq.s32.totalorder %v885_v4, %v446_v19 }
  0xdf   : > { %v492_v23 = vsel %vm476_vm10, %v959_v21, 0.0 }
  0xe0   : > { %340 = vadd.xlane.f32.xlu0 %v751_v49  ;;  %346 = vadd.xlane.f32.xlu1 %v753_v18 }
  0xe1   : > { %v452_v3 = vpop.permute.xlu1 %451 }
  0xe2   : > { %vm478_vm12 = vcmp.eq.s32.totalorder %v885_v4, %v452_v3 }
  0xe3   : > { %v494_v17 = vsel %vm478_vm12, %v977_v25, 0.0  ;;  %v467_v25 = vpop.permute.xlu0 %466 }
  0xe4   : > { %344 = vadd.xlane.f32.xlu0 %v755_v7  ;;  %348 = vadd.xlane.f32.xlu1 %v757_v51  ;;  %vm483_vm1 = vcmp.eq.s32.totalorder %v885_v4, %v467_v25  ;;  %v532_v7 = vld [vmem:[%s879_s24] sm:$0xff] }
  0xe5   : > { %v458_v39 = vpop.permute.xlu1 %457  ;;  %v499_v6 = vsel %vm483_vm1, %v1010_v32, 0.0 }
  0xe6   : > { %vm480_vm14 = vcmp.eq.s32.totalorder %v885_v4, %v458_v39  ;;  %v535_v39 = vld [vmem:[%s879_s24 + $0x18] sm:$0xff] }
  0xe7   : > { %v496_v16 = vsel %vm480_vm14, %v995_v29, 0.0 }
  0xe8   : > { %508 = vadd.xlane.f32.xlu0 %v488_v0  ;;  %350 = vadd.xlane.f32.xlu1 %v759_v34  ;;  %v533_v0 = vld [vmem:[%s879_s24 + $0x8] sm:$0xff] }
  0xe9   : > { %v464_v21 = vpop.permute.xlu1 %463 }
  0xea   : > { %vm482_vm0 = vcmp.eq.s32.totalorder %v885_v4, %v464_v21 }
  0xeb   : > { %v498_v20 = vsel %vm482_vm0, %v1013_v33, 0.0 }
  0xec   : > { %510 = vadd.xlane.f32.xlu0 %v489_v36  ;;  %352 = vadd.xlane.f32.xlu1 %v761_v1 }
  0xf0   : > { %512 = vadd.xlane.f32.xlu0 %v490_v37  ;;  %354 = vadd.xlane.f32.xlu1 %v763_v5 }
  0xf4   : > { %516 = vadd.xlane.f32.xlu0 %v492_v23  ;;  %514 = vadd.xlane.f32.xlu1 %v491_v12  ;;  %v534_v12 = vld [vmem:[%s879_s24 + $0x10] sm:$0xff] }
  0xf8   : > { %520 = vadd.xlane.f32.xlu0 %v494_v17  ;;  %518 = vadd.xlane.f32.xlu1 %v493_v41 }
  0xfc   : > { %524 = vadd.xlane.f32.xlu0 %v496_v16  ;;  %522 = vadd.xlane.f32.xlu1 %v495_v26 }
 0x100   : > { %528 = vadd.xlane.f32.xlu0 %v498_v20  ;;  %526 = vadd.xlane.f32.xlu1 %v497_v9 }
 0x104   : > { %530 = vadd.xlane.f32.xlu1 %v499_v6 }
 0x14d   : > { %v503_v29 = vpop.xlane.xlu0 %502 }
 0x151   : > { %v501_v24 = vpop.xlane.xlu1 %500  ;;  %v505_v10 = vpop.xlane.xlu0 %504 }
 0x155   : > { %v325_v43 = vpop.xlane.xlu1 %324  ;;  %v507_v44 = vpop.xlane.xlu0 %506 }
 0x156   : > { %764 = vlog2.f32 %v325_v43 }
 0x159   : > { %v331_v27 = vpop.xlane.xlu1 %330  ;;  %v327_v45 = vpop.xlane.xlu0 %326 }
 0x15a   : > { %766 = vlog2.f32 %v331_v27 }
 0x15b   : > { %768 = vlog2.f32 %v327_v45 }
 0x15d   : > { %v335_v33 = vpop.xlane.xlu1 %334  ;;  %v329_v8 = vpop.xlane.xlu0 %328 }
 0x15e   : > { %770 = vlog2.f32 %v329_v8 }
 0x15f   : > { %772 = vlog2.f32 %v335_v33  ;;  %v537_v33 = vld [vmem:[%s879_s24 + $0x28] sm:$0xff] }
 0x161   : > { %v339_v4 = vpop.xlane.xlu1 %338  ;;  %v333_v28 = vpop.xlane.xlu0 %332 }
 0x162   : > { %774 = vlog2.f32 %v333_v28 }
 0x163   : > { %v765_v31 = vpop.eup %764  ;;  %776 = vlog2.f32 %v339_v4 }
 0x164   : > { %v357_v32 = vmul.f32 0.6931472, %v765_v31 }
 0x165   : > { %v343_v14 = vpop.xlane.xlu1 %342  ;;  %v337_v46 = vpop.xlane.xlu0 %336 }
 0x166   : > { %v388_v47 = vadd.f32 %v357_v32, %v1047_v53  ;;  %778 = vlog2.f32 %v337_v46 }
 0x167   : > { %v767_v30 = vpop.eup %766 }
 0x168   : > { %v769_v48 = vpop.eup %768  ;;  %v363_v15 = vmul.f32 0.6931472, %v767_v30  ;;  %v548_v35 = vsub.f32 %v388_v47, %v501_v24 }
 0x169   : > { %v359_v49 = vmul.f32 0.6931472, %v769_v48  ;;  %v347_v50 = vpop.xlane.xlu1 %346  ;;  %v341_v18 = vpop.xlane.xlu0 %340 }
 0x16a   : > { %v391_v51 = vadd.f32 %v363_v15, %v1049_v54  ;;  %780 = vlog2.f32 %v341_v18  ;;  %v564_v5 = vmul.f32 %v548_v35, %v532_v7 }
 0x16b   : > { %v389_v34 = vadd.f32 %v359_v49, %v1051_v55  ;;  %v771_v19 = vpop.eup %770  ;;  %782 = vlog2.f32 %v343_v14 }
 0x16c   : > { %v773_v53 = vpop.eup %772  ;;  %v361_v22 = vmul.f32 0.6931472, %v771_v19  ;;  %784 = vlog2.f32 %v347_v50  ;;  %v551_v37 = vsub.f32 %v391_v51, %v507_v44  ;;  %v582_v26 = vsel %vm581_vm2, %v564_v5, 0.0  ;;  %v538_v50 = vld [vmem:[%s879_s24 + $0x30] sm:$0xff] }
 0x16d   : > { %v549_v1 = vsub.f32 %v389_v34, %v503_v29  ;;  %v349_v36 = vpop.xlane.xlu1 %348  ;;  %v345_v3 = vpop.xlane.xlu0 %344  ;;  %v367_v23 = vmul.f32 0.6931472, %v773_v53  ;;  %v536_v29 = vld [vmem:[%s879_s24 + $0x20] sm:$0xff] }
 0x16e   : > { %786 = vlog2.f32 %v349_v36  ;;  %v390_v54 = vadd.f32 %v361_v22, %v1045_v52  ;;  %v567_v20 = vmul.f32 %v551_v37, %v535_v39  ;;  %v540_v37 = vld [vmem:[%s879_s24 + $0x40] sm:$0xff] }
 0x16f   : > { %v565_v13 = vmul.f32 %v549_v1, %v533_v0  ;;  %788 = vlog2.f32 %v345_v3  ;;  %v775_v55 = vpop.eup %774  ;;  %v393_v43 = vadd.f32 %v367_v23, %v1053_v56  ;;  %v539_v3 = vld [vmem:[%s879_s24 + $0x38] sm:$0xff] }
 0x170   : > { %v550_v17 = vsub.f32 %v390_v54, %v505_v10  ;;  %v365_v41 = vmul.f32 0.6931472, %v775_v55  ;;  %v777_v25 = vpop.eup %776  ;;  %v587_v32 = vsel %vm581_vm2, %v567_v20, 0.0  ;;  %v542_v20 = vld [vmem:[%s879_s24 + $0x50] sm:$0xff] }
 0x171   : > { %v583_v40 = vsel %vm581_vm2, %v565_v13, 0.0  ;;  %v351_v21 = vpop.xlane.xlu1 %350  ;;  %v509_v16 = vpop.xlane.xlu0 %508  ;;  %v371_v31 = vmul.f32 0.6931472, %v777_v25 }
 0x172   : > { %v566_v9 = vmul.f32 %v550_v17, %v534_v12  ;;  %790 = vlog2.f32 %v351_v21  ;;  %v392_v52 = vadd.f32 %v365_v41, %v1055_v57  ;;  %v584_v24 = vadd.f32 %v583_v40, %v582_v26  ;;  %v541_v26 = vld [vmem:[%s879_s24 + $0x48] sm:$0xff] }
 0x173   : > { %v779_v6 = vpop.eup %778  ;;  %v395_v19 = vadd.f32 %v371_v31, %v1057_v58  ;;  %v544_v31 = vld [vmem:[%s879_s24 + $0x60] sm:$0xff] }
 0x174   : > { %v369_v44 = vmul.f32 0.6931472, %v779_v6  ;;  %v585_v10 = vsel %vm581_vm2, %v566_v9, 0.0  ;;  %v552_v27 = vsub.f32 %v392_v52, %v509_v16 }
 0x175   : > { %v353_v45 = vpop.xlane.xlu1 %352  ;;  %v511_v8 = vpop.xlane.xlu0 %510  ;;  %v586_v4 = vadd.f32 %v585_v10, %v584_v24 }
 0x176   : > { %792 = vlog2.f32 %v353_v45  ;;  %v553_v28 = vsub.f32 %v393_v43, %v511_v8  ;;  %v568_v57 = vmul.f32 %v552_v27, %v536_v29  ;;  %v394_v56 = vadd.f32 %v369_v44, %v1059_v59 }
 0x177   : > { %v781_v14 = vpop.eup %780  ;;  %v588_v46 = vadd.f32 %v587_v32, %v586_v4  ;;  %v543_v4 = vld [vmem:[%s879_s24 + $0x58] sm:$0xff] }
 0x178   : > { %v569_v47 = vmul.f32 %v553_v28, %v537_v33  ;;  %v783_v30 = vpop.eup %782  ;;  %v373_v48 = vmul.f32 0.6931472, %v781_v14  ;;  %v589_v15 = vsel %vm581_vm2, %v568_v57, 0.0 }
 0x179   : > { %v355_v49 = vpop.xlane.xlu1 %354  ;;  %v513_v18 = vpop.xlane.xlu0 %512  ;;  %v590_v34 = vadd.f32 %v589_v15, %v588_v46  ;;  %v375_v53 = vmul.f32 0.6931472, %v783_v30 }
 0x17a   : > { %v785_v35 = vpop.eup %784  ;;  %794 = vlog2.f32 %v355_v49  ;;  %v554_v7 = vsub.f32 %v394_v56, %v513_v18  ;;  %v591_v59 = vsel %vm581_vm2, %v569_v47, 0.0  ;;  %v396_v22 = vadd.f32 %v373_v48, %v1063_v61  ;;  %v545_v18 = vld [vmem:[%s879_s24 + $0x68] sm:$0xff] }
 0x17b   : > { %v787_v51 = vpop.eup %786  ;;  %v379_v23 = vmul.f32 0.6931472, %v785_v35  ;;  %v592_v12 = vadd.f32 %v591_v59, %v590_v34  ;;  %v397_v21 = vadd.f32 %v375_v53, %v1061_v60 }
 0x17c   : > { %v789_v0 = vpop.eup %788  ;;  %v570_v1 = vmul.f32 %v554_v7, %v538_v50  ;;  %v381_v58 = vmul.f32 0.6931472, %v787_v51  ;;  %v546_v7 = vld [vmem:[%s879_s24 + $0x70] sm:$0xff] }
 0x17d   : > { %v377_v36 = vmul.f32 0.6931472, %v789_v0  ;;  %v515_v5 = vpop.xlane.xlu1 %514  ;;  %v517_v13 = vpop.xlane.xlu0 %516  ;;  %v399_v10 = vadd.f32 %v379_v23, %v1065_v62 }
 0x17e   : > { %v593_v54 = vsel %vm581_vm2, %v570_v1, 0.0  ;;  %v555_v55 = vsub.f32 %v395_v19, %v515_v5  ;;  %v556_v39 = vsub.f32 %v396_v22, %v517_v13  ;;  %v400_v60 = vadd.f32 %v381_v58, %v1077_v38 }
 0x17f   : > { %v791_v40 = vpop.eup %790  ;;  %v398_v61 = vadd.f32 %v377_v36, %v1067_v63  ;;  %v594_v16 = vadd.f32 %v593_v54, %v592_v12 }
 0x180   : > { %v571_v17 = vmul.f32 %v555_v55, %v539_v3  ;;  %v572_v41 = vmul.f32 %v556_v39, %v540_v37  ;;  %v383_v43 = vmul.f32 0.6931472, %v791_v40  ;;  %v547_v3 = vld [vmem:[%s879_s24 + $0x78] sm:$0xff] }
 0x181   : > { %v519_v25 = vpop.xlane.xlu1 %518  ;;  %v521_v9 = vpop.xlane.xlu0 %520 }
 0x182   : > { %v595_v52 = vsel %vm581_vm2, %v571_v17, 0.0  ;;  %v557_v6 = vsub.f32 %v397_v21, %v519_v25  ;;  %v558_v29 = vsub.f32 %v398_v61, %v521_v9  ;;  %v597_v63 = vsel %vm581_vm2, %v572_v41, 0.0 }
 0x183   : > { %v793_v24 = vpop.eup %792  ;;  %v596_v44 = vadd.f32 %v595_v52, %v594_v16  ;;  %v401_v56 = vadd.f32 %v383_v43, %v1073_v2  ;;  %v580_v16 = vld [vmem:[#allocation2] sm:$0x1] }
 0x184   : > { %v385_v27 = vmul.f32 0.6931472, %v793_v24  ;;  %v573_v45 = vmul.f32 %v557_v6, %v541_v26  ;;  %v574_v33 = vmul.f32 %v558_v29, %v542_v20 }
 0x185   : > { %v598_v8 = vadd.f32 %v597_v63, %v596_v44  ;;  %v523_v28 = vpop.xlane.xlu1 %522  ;;  %v525_v32 = vpop.xlane.xlu0 %524 }
 0x186   : > { %v599_v57 = vsel %vm581_vm2, %v573_v45, 0.0  ;;  %v559_v14 = vsub.f32 %v399_v10, %v523_v28  ;;  %v560_v46 = vsub.f32 %v400_v60, %v525_v32  ;;  %v601_v38 = vsel %vm581_vm2, %v574_v33, 0.0 }
 0x187   : > { %v795_v47 = vpop.eup %794  ;;  %v600_v62 = vadd.f32 %v599_v57, %v598_v8  ;;  %v402_v49 = vadd.f32 %v385_v27, %v1087_v11 }
 0x188   : > { %v387_v30 = vmul.f32 0.6931472, %v795_v47  ;;  %v575_v48 = vmul.f32 %v559_v14, %v543_v4  ;;  %v576_v15 = vmul.f32 %v560_v46, %v544_v31 }
 0x189   : > { %v602_v50 = vadd.f32 %v601_v38, %v600_v62  ;;  %v527_v35 = vpop.xlane.xlu1 %526  ;;  %v529_v51 = vpop.xlane.xlu0 %528 }
 0x18a   : > { %v603_v34 = vsel %vm581_vm2, %v575_v48, 0.0  ;;  %v561_v19 = vsub.f32 %v401_v56, %v527_v35  ;;  %v562_v0 = vsub.f32 %v402_v49, %v529_v51  ;;  %v605_v59 = vsel %vm581_vm2, %v576_v15, 0.0 }
 0x18b   : > { %v604_v53 = vadd.f32 %v603_v34, %v602_v50  ;;  %v403_v22 = vadd.f32 %v387_v30, %v1083_v42 }
 0x18c   : > { %v577_v1 = vmul.f32 %v561_v19, %v545_v18  ;;  %v578_v2 = vmul.f32 %v562_v0, %v546_v7 }
 0x18d   : > { %v606_v36 = vadd.f32 %v605_v59, %v604_v53  ;;  %v531_v5 = vpop.xlane.xlu1 %530 }
 0x18e   : > { %v607_v11 = vsel %vm581_vm2, %v577_v1, 0.0  ;;  %v563_v37 = vsub.f32 %v403_v22, %v531_v5  ;;  %v609_v55 = vsel %vm581_vm2, %v578_v2, 0.0 }
 0x18f   : > { %v608_v13 = vadd.f32 %v607_v11, %v606_v36 }
 0x190   : > { %v579_v54 = vmul.f32 %v563_v37, %v547_v3 }
 0x191   : > { %v610_v39 = vadd.f32 %v609_v55, %v608_v13 }
 0x192   : > { %v611_v23 = vsel %vm581_vm2, %v579_v54, 0.0 }
 0x193   : > { %v612_v58 = vadd.f32 %v611_v23, %v610_v39 }
 0x195   : > { %613 = vadd.xlane.f32.xlu0 %v612_v58 }
 0x21e   : > { %v614_v12 = vpop.xlane.xlu0 %613 }
 0x21f   : > { %v615_v40 = vrot.slane %v614_v12, 4 }
 0x221   : > { %v616_v17 = vadd.f32 %v615_v40, %v614_v12 }
 0x223   : > { %v617_v42 = vrot.slane %v616_v17, 2 }
 0x225   : > { %v618_v41 = vadd.f32 %v617_v42, %v616_v17 }
 0x227   : > { %v619_v21 = vrot.slane %v618_v41, 1 }
 0x229   : > { %v620_v61 = vadd.f32 %v619_v21, %v618_v41 }
 0x22b   : > { %711 = vpush %v620_v61 }
 0x25c   : > { %s712_s27 = spop %711 }
 0x25d   : > { %v622_v26 = vstv %s712_s27 }
 0x25e   : > { %v623_v25 = vadd.f32 %v622_v26, %v580_v16 }
 0x260   : > { %625 = vst.msk [vmem:[#allocation2] sm:$0x1] %vm624_vm3, %v623_v25 }
 0x261   : > { %809 = shalt.err (!%p806_p12)
}
 0x262   : > { %714 = dma.vmem_to_hbm [thread:$0]  (%p717_p5), %s634_s26, 16, %s1207_s3, [#allocation3]  }
 0x263   : > { %825 = dma.done.wait (%p717_p5), [#allocation3], 16  }
 0x264   : > { %827 = vsyncadd (%p717_p5), [#allocation3], 4294967280 }
 0x265 PF: > { %s14_s12 = sadd.s32 1, %s830_s12  }
 0x266   : > { %p11_p13 = scmp.ge.s32.totalorder %s14_s12, 4  }
 0x268   :  { %13 = sbr.rel (!%p11_p13) target bundleno = 1 (0x1), region = 69 }
 0x26d   :  { %646 = vsyncpa [#allocation3], 1 }
 0x26e   :  { %648 = vsyncpa [#allocation3 + $0x1], 1 }

// kernel: gcn_forward.6
= control target key start
LH: loop header
LB: loop body
LE: loop exit
PB: predicated region body
PF: predicated region fallthrough
CT: control target
= control target key end

     0   :  { %s1611_s18 = smov 0   ;;  %s1613_s19 = smov 0   ;;  %s1843_s0 = inlined_call_operand.vmem [shape: bf16[256,256], index: 0, kind: input, shape index: {}]   ;;  %s1844_s1 = inlined_call_operand.vmem [shape: bf16[256,128], index: 1, kind: input, shape index: {}]   ;;  %s1845_s2 = inlined_call_operand.vmem [shape: f32[128,128], index: 2, kind: input, shape index: {}]   ;;  %s1846_s3 = inlined_call_operand.vmem [shape: f32[1,128], index: 3, kind: input, shape index: {}]   ;;  %s1847_s4 = inlined_call_operand.vmem [shape: f32[256,1], index: 4, kind: input, shape index: {}]   ;;  %s1848_s5 = inlined_call_operand.vmem [shape: f32[256,128], index: 5, kind: output, shape index: {}]  }
   0x1   :  { %s1615_s20 = smov 0   ;;  %s1617_s21 = smov 0  }
   0x2   :  { %s1619_s22 = smov 0   ;;  %s1621_s23 = smov 0  }
   0x3   :  { %s1623_s24 = smov 0  }
   0x4 LB: > { %s24_s25 = sadd.s32 1, %s1569_s22  ;;  %s27_s26 = sadd.s32 1, %s1573_s23  ;;  %s1577_s24 = sphi %s1623_s24, %s15_s24   ;;  %s1573_s23 = sphi %s1621_s23, %s1854_s23   ;;  %s1569_s22 = sphi %s1619_s22, %s1853_s22   ;;  %s1565_s21 = sphi %s1617_s21, %s1852_s21   ;;  %s1561_s20 = sphi %s1615_s20, %s1851_s20   ;;  %s1557_s19 = sphi %s1613_s19, %s1850_s19   ;;  %s1553_s18 = sphi %s1611_s18, %s1849_s18  }
   0x5   : > { %p25_p0 = scmp.ge.s32.totalorder %s24_s25, 2  ;;  %p43_p1 = scmp.ne.s32.totalorder %s1557_s19, %s1553_s18 }
   0x6   : > { %p44_p2 = scmp.eq.s32.totalorder %s1577_s24, 0  ;;  %s36_s30 = sadd.s32 1, %s1557_s19 }
   0x7   : > { %s1856_s25 = smov (%p25_p0, %s24_s25), 0  ;;  %s1858_s26 = smov (!%p25_p0, %s27_s26), %s1573_s23 }
   0x8   : > { %p45_p3 = por %p44_p2, %p43_p1  ;;  %p29_p4 = scmp.ge.s32.totalorder %s1858_s26, 2 }
   0x9   : > { %s32_s27 = ssub.s32 %s1569_s22, %s1856_s25  ;;  %p1188_p6 = scmp.ge.s32.totalorder %s1577_s24, 4 }
   0xa   : > { %s1860_s26 = smov (%p29_p4, %s1858_s26), 0 }
   0xb   : > { %s31_s28 = ssub.s32 %s1573_s23, %s1860_s26  ;;  %195 = sbr.rel (%p1188_p6) target bundleno = 32 (0x20), region = 24 }
   0xc   : > { %s33_s29 = sor.u32 %s32_s27, %s31_s28 }
   0xd   : > { %p34_p5 = scmp.eq.s32.totalorder %s33_s29, 0 }
   0xf   : > { %s1662_s6 = scalar_select %p34_p5, %s1557_s19, %s36_s30  }
  0x10   : > { %198 = sbr.rel (!%p45_p3) target bundleno = 32 (0x20), region = 28  ;;  %s200_s7 = sand.u32 (%p45_p3), 1, %s1557_s19  }
  0x11   : > { %s1223_s8 = sshll.u32 (%p45_p3), %s1573_s23, 5  ;;  %s1189_s9 = sshll.u32 (%p45_p3), %s200_s7, 6 }
  0x12   : > { %s205_s10 = sadd.s32 (%p45_p3), %s1569_s22, %s1223_s8  ;;  %s202_s15 = scalar_lea.vmem (%p45_p3), [#allocation3], %s1189_s9 }
  0x13   : > { %s1192_s11 = sshll.u32 (%p45_p3), %s205_s10, 2 }
  0x14   : > { %s1671_s14 = scalar_lea.vmem (%p45_p3), %s1843_s0, %s1192_s11 }
  0x15   : > { %v224_v0 = vld [vmem:[%s1671_s14] sm:$0xf]  ;;  %v226_v1 = vld [vmem:[%s1671_s14 + $0x8] sm:$0xf]  ;;  %v228_v2 = vld [vmem:[%s1671_s14 + $0x10] sm:$0xf] }
  0x16   : > { %225 = vst [vmem:[%s202_s15] sm:$0xf] %v224_v0  ;;  %227 = vst [vmem:[%s202_s15 + $0x4] sm:$0xf] %v226_v1  ;;  %v230_v3 = vld [vmem:[%s1671_s14 + $0x18] sm:$0xf] }
  0x17   : > { %229 = vst [vmem:[%s202_s15 + $0x8] sm:$0xf] %v228_v2  ;;  %v232_v4 = vld [vmem:[%s1671_s14 + $0x20] sm:$0xf]  ;;  %v234_v5 = vld [vmem:[%s1671_s14 + $0x28] sm:$0xf] }
  0x18   : > { %231 = vst [vmem:[%s202_s15 + $0xc] sm:$0xf] %v230_v3  ;;  %233 = vst [vmem:[%s202_s15 + $0x10] sm:$0xf] %v232_v4  ;;  %v236_v6 = vld [vmem:[%s1671_s14 + $0x30] sm:$0xf] }
  0x19   : > { %235 = vst [vmem:[%s202_s15 + $0x14] sm:$0xf] %v234_v5  ;;  %v238_v7 = vld [vmem:[%s1671_s14 + $0x38] sm:$0xf]  ;;  %v240_v8 = vld [vmem:[%s1671_s14 + $0x40] sm:$0xf] }
  0x1a   : > { %237 = vst [vmem:[%s202_s15 + $0x18] sm:$0xf] %v236_v6  ;;  %239 = vst [vmem:[%s202_s15 + $0x1c] sm:$0xf] %v238_v7  ;;  %v242_v9 = vld [vmem:[%s1671_s14 + $0x48] sm:$0xf] }
  0x1b   : > { %241 = vst [vmem:[%s202_s15 + $0x20] sm:$0xf] %v240_v8  ;;  %v244_v10 = vld [vmem:[%s1671_s14 + $0x50] sm:$0xf]  ;;  %v246_v11 = vld [vmem:[%s1671_s14 + $0x58] sm:$0xf] }
  0x1c   : > { %243 = vst [vmem:[%s202_s15 + $0x24] sm:$0xf] %v242_v9  ;;  %245 = vst [vmem:[%s202_s15 + $0x28] sm:$0xf] %v244_v10  ;;  %v248_v12 = vld [vmem:[%s1671_s14 + $0x60] sm:$0xf] }
  0x1d   : > { %247 = vst [vmem:[%s202_s15 + $0x2c] sm:$0xf] %v246_v11  ;;  %v250_v13 = vld [vmem:[%s1671_s14 + $0x68] sm:$0xf]  ;;  %v252_v14 = vld [vmem:[%s1671_s14 + $0x70] sm:$0xf] }
  0x1e   : > { %249 = vst [vmem:[%s202_s15 + $0x30] sm:$0xf] %v248_v12  ;;  %251 = vst [vmem:[%s202_s15 + $0x34] sm:$0xf] %v250_v13  ;;  %v254_v15 = vld [vmem:[%s1671_s14 + $0x78] sm:$0xf] }
  0x1f   : > { %253 = vst [vmem:[%s202_s15 + $0x38] sm:$0xf] %v252_v14  ;;  %255 = vst [vmem:[%s202_s15 + $0x3c] sm:$0xf] %v254_v15 }
  0x20 PF: > { %p1193_p7 = scmp.ge.s32.totalorder %s1577_s24, 1  ;;  %p328_p8 = scmp.lt.s32.totalorder %s1577_s24, 5 }
  0x22   : > { %p329_p9 = pnand %p1193_p7, %p328_p8 }
  0x23   : > { %s335_s16 = sand.u32 (!%p329_p9), 1, %s1553_s18   ;;  %s1195_s17 = sshll.u32 (!%p329_p9), %s1561_s20, 4 }
  0x24   : > { %332 = sbr.rel (%p329_p9) target bundleno = 566 (0x236), region = 77  ;;  %s1194_s27 = sshll.u32 (!%p329_p9), %s335_s16, 6 }
  0x25   : > { %p374_p10 = scmp.lt.s32.totalorder (!%p329_p9), %s1195_s17, 31  ;;  %s1197_s28 = sshll.u32 (!%p329_p9), %s1565_s21, 4 }
  0x26   : > { %p380_p11 = scmp.lt.s32.totalorder (!%p329_p9), %s1197_s28, 31  ;;  %s1709_s15 = scalar_lea.vmem (!%p329_p9), [#allocation3], %s1194_s27 }
  0x27   : > { %p1201_p12 = scmp.ne.s32.totalorder (!%p329_p9), %s1561_s20, 0 }
  0x29   : > { %s1862_s17 = smov (!%p374_p10, %s1195_s17), 31  ;;  %s1864_s28 = smov (!%p380_p11, %s1197_s28), 31 }
  0x2a   : > { %s1196_s29 = sshll.u32 %s1862_s17, 2  ;;  %s1198_s9 = sshll.u32 %s1864_s28, 3 }
  0x2b   : > { %s1697_s8 = scalar_lea.vmem %s1844_s1, %s1196_s29  ;;  %s1702_s12 = scalar_lea.vmem %s1847_s4, %s1198_s9 }
  0x2c   : > { %s1707_s14 = scalar_lea.vmem %s1848_s5, %s1198_s9  ;;  %395 = sbr.rel (%p1201_p12) target bundleno = 58 (0x3a), region = 85 }
  0x31   : > { %v1579_v16 = vmov 0.0  }
  0x32   : > { %396 = vst [vmem:[#allocation2 + $0x30] sm:$0xff] %v1579_v16  ;;  %397 = vst [vmem:[#allocation2] sm:$0xff] %v1579_v16 }
  0x33   : > { %398 = vst [vmem:[#allocation2 + $0x58] sm:$0xff] %v1579_v16  ;;  %399 = vst [vmem:[#allocation2 + $0x18] sm:$0xff] %v1579_v16 }
  0x34   : > { %400 = vst [vmem:[#allocation2 + $0x50] sm:$0xff] %v1579_v16  ;;  %401 = vst [vmem:[#allocation2 + $0x68] sm:$0xff] %v1579_v16 }
  0x35   : > { %402 = vst [vmem:[#allocation2 + $0x8] sm:$0xff] %v1579_v16  ;;  %403 = vst [vmem:[#allocation2 + $0x48] sm:$0xff] %v1579_v16 }
  0x36   : > { %404 = vst [vmem:[#allocation2 + $0x40] sm:$0xff] %v1579_v16  ;;  %405 = vst [vmem:[#allocation2 + $0x20] sm:$0xff] %v1579_v16 }
  0x37   : > { %406 = vst [vmem:[#allocation2 + $0x10] sm:$0xff] %v1579_v16  ;;  %407 = vst [vmem:[#allocation2 + $0x38] sm:$0xff] %v1579_v16 }
  0x38   : > { %408 = vst [vmem:[#allocation2 + $0x60] sm:$0xff] %v1579_v16  ;;  %409 = vst [vmem:[#allocation2 + $0x70] sm:$0xff] %v1579_v16 }
  0x39   : > { %410 = vst [vmem:[#allocation2 + $0x78] sm:$0xff] %v1579_v16  ;;  %411 = vst [vmem:[#allocation2 + $0x28] sm:$0xff] %v1579_v16 }
  0x3a PF: > { %v1505_v17 = vld [vmem:[%s1697_s8 + $0x38] sm:$0xff]   ;;  %v1506_v18 = vld [vmem:[%s1697_s8 + $0x30] sm:$0xff]   ;;  %v1507_v19 = vld [vmem:[%s1697_s8 + $0x28] sm:$0xff]   ;;  %p1218_p13 = scmp.ne.s32.totalorder %s1561_s20, %s1565_s21 }
  0x3b   : > { %1311 = vmatprep.subr.bf16.mxu0 %v1505_v17  ;;  %1399 = vmatprep.subr.bf16.mxu1 %v1505_v17  ;;  %v1508_v20 = vld [vmem:[%s1697_s8 + $0x20] sm:$0xff]   ;;  %v1509_v23 = vld [vmem:[%s1697_s8 + $0x18] sm:$0xff]   ;;  %v1510_v24 = vld [vmem:[%s1697_s8 + $0x10] sm:$0xff]  }
  0x3c   : > { %1312 = vmatpush3.bf16.msra.mxu0 %v1505_v17  ;;  %1407 = vmatpush3.bf16.msra.mxu1 %v1505_v17  ;;  %v1513_v21 = vld [vmem:[%s1709_s15] sm:$0xff]   ;;  %v1511_v25 = vld [vmem:[%s1697_s8 + $0x8] sm:$0xff]   ;;  %v1517_v29 = vld [vmem:[%s1709_s15 + $0x10] sm:$0xff]  }
  0x3d   : > { %1313 = vmatprep.subr.bf16.mxu0 %v1506_v18  ;;  %1400 = vmatprep.subr.bf16.mxu1 %v1506_v18  ;;  %v1514_v22 = vld [vmem:[%s1709_s15 + $0x20] sm:$0xff]   ;;  %v1515_v27 = vld [vmem:[%s1709_s15 + $0x8] sm:$0xff]   ;;  %v1518_v30 = vld [vmem:[%s1709_s15 + $0x30] sm:$0xff]  }
  0x3e   : > { %1327 = vmatprep.mubr.bf16.mxu0 %v1513_v21  ;;  %1335 = vmatprep.mubr.bf16.mxu1 %v1514_v22  ;;  %v1512_v26 = vld [vmem:[%s1697_s8] sm:$0xff]   ;;  %v1516_v28 = vld [vmem:[%s1709_s15 + $0x28] sm:$0xff]   ;;  %v1519_v31 = vld [vmem:[%s1709_s15 + $0x18] sm:$0xff]  }
  0x3f   : > { %v1520_v32 = vld [vmem:[%s1709_s15 + $0x38] sm:$0xff]   ;;  %v422_v34 = vld [vmem:[#allocation2 + $0x10] sm:$0xff]  ;;  %v420_v38 = vld [vmem:[#allocation2 + $0x40] sm:$0xff] }
  0x40   : > { %1314 = vmatpush3.bf16.msra.mxu0 %v1506_v18  ;;  %1408 = vmatpush3.bf16.msra.mxu1 %v1506_v18  ;;  %v414_v33 = vld [vmem:[#allocation2 + $0x58] sm:$0xff]  ;;  %v412_v37 = vld [vmem:[#allocation2 + $0x30] sm:$0xff]  ;;  %v413_v49 = vld [vmem:[#allocation2] sm:$0xff] }
  0x41   : > { %1315 = vmatprep.subr.bf16.mxu0 %v1507_v19  ;;  %1401 = vmatprep.subr.bf16.mxu1 %v1507_v19  ;;  %v415_v43 = vld [vmem:[#allocation2 + $0x18] sm:$0xff]  ;;  %v421_v50 = vld [vmem:[#allocation2 + $0x20] sm:$0xff]  ;;  %v418_v55 = vld [vmem:[#allocation2 + $0x8] sm:$0xff] }
  0x42   : > { %v423_v44 = vld [vmem:[#allocation2 + $0x38] sm:$0xff]  ;;  %v416_v61 = vld [vmem:[#allocation2 + $0x50] sm:$0xff]  ;;  %v424_v62 = vld [vmem:[#allocation2 + $0x60] sm:$0xff] }
  0x43   : > { %v426_v56 = vld [vmem:[#allocation2 + $0x78] sm:$0xff]  ;;  %v419_v3 = vld [vmem:[#allocation2 + $0x48] sm:$0xff]  ;;  %v425_v10 = vld [vmem:[#allocation2 + $0x70] sm:$0xff] }
  0x44   : > { %1316 = vmatpush3.bf16.msra.mxu0 %v1507_v19  ;;  %1409 = vmatpush3.bf16.msra.mxu1 %v1507_v19  ;;  %v427_v4 = vld [vmem:[#allocation2 + $0x28] sm:$0xff] }
  0x45   : > { %1317 = vmatprep.subr.bf16.mxu0 %v1508_v20  ;;  %1402 = vmatprep.subr.bf16.mxu1 %v1508_v20  ;;  %v417_v9 = vld [vmem:[#allocation2 + $0x68] sm:$0xff] }
  0x48   : > { %1318 = vmatpush3.bf16.msra.mxu0 %v1508_v20  ;;  %1410 = vmatpush3.bf16.msra.mxu1 %v1508_v20 }
  0x49   : > { %1319 = vmatprep.subr.bf16.mxu0 %v1509_v23  ;;  %1403 = vmatprep.subr.bf16.mxu1 %v1509_v23 }
  0x4c   : > { %1320 = vmatpush3.bf16.msra.mxu0 %v1509_v23  ;;  %1411 = vmatpush3.bf16.msra.mxu1 %v1509_v23 }
  0x4d   : > { %1321 = vmatprep.subr.bf16.mxu0 %v1510_v24  ;;  %1404 = vmatprep.subr.bf16.mxu1 %v1510_v24 }
  0x50   : > { %1322 = vmatpush3.bf16.msra.mxu0 %v1510_v24  ;;  %1412 = vmatpush3.bf16.msra.mxu1 %v1510_v24 }
  0x51   : > { %1323 = vmatprep.subr.bf16.mxu0 %v1511_v25  ;;  %1405 = vmatprep.subr.bf16.mxu1 %v1511_v25 }
  0x54   : > { %1324 = vmatpush3.bf16.msra.mxu0 %v1511_v25  ;;  %1413 = vmatpush3.bf16.msra.mxu1 %v1511_v25 }
  0x55   : > { %1325 = vmatprep.subr.bf16.mxu0 %v1512_v26  ;;  %1406 = vmatprep.subr.bf16.mxu1 %v1512_v26 }
  0x58   : > { %1326 = vmatpush3.bf16.msra.mxu0 %v1512_v26  ;;  %1414 = vmatpush3.bf16.msra.mxu1 %v1512_v26 }
  0x5b   : > { %1328 = vmatmul.mubr.bf16.vlgmr.msra.gmra.mxu0 %v1515_v27  ;;  %1336 = vmatmul.mubr.bf16.vlgmr.msra.gmra.mxu1 %v1516_v28 }
  0x5c   : > { %1331 = vmatprep.mubr.bf16.mxu0 %v1517_v29  ;;  %1339 = vmatprep.mubr.bf16.mxu1 %v1518_v30 }
  0x63   : > { %1332 = vmatmul.mubr.bf16.gmra.mxu0 %v1519_v31  ;;  %1340 = vmatmul.mubr.bf16.gmra.mxu1 %v1520_v32 }
 0x11b   : > { %v1329_v35 = vpop.f32.mrf.mxu0  ;;  %v1337_v36 = vpop.f32.mrf.mxu1 }
 0x11c   : > { %v655_v39 = vadd.f32 %v1329_v35, %v414_v33  ;;  %v663_v40 = vadd.f32 %v1337_v36, %v422_v34 }
 0x11d   : > { %v590_v41 = vpop.f32.mrf.mxu0  ;;  %v622_v42 = vpop.f32.mrf.mxu1 }
 0x11e   : > { %671 = vst [vmem:[#allocation2 + $0x58] sm:$0xff] %v655_v39  ;;  %679 = vst [vmem:[#allocation2 + $0x10] sm:$0xff] %v663_v40  ;;  %v653_v45 = vadd.f32 %v590_v41, %v412_v37  ;;  %v661_v46 = vadd.f32 %v622_v42, %v420_v38 }
 0x11f   : > { %v1330_v47 = vpop.f32.mrf.mxu0  ;;  %v1338_v48 = vpop.f32.mrf.mxu1 }
 0x120   : > { %669 = vst [vmem:[#allocation2 + $0x30] sm:$0xff] %v653_v45  ;;  %677 = vst [vmem:[#allocation2 + $0x40] sm:$0xff] %v661_v46  ;;  %v656_v51 = vadd.f32 %v1330_v47, %v415_v43  ;;  %v664_v52 = vadd.f32 %v1338_v48, %v423_v44 }
 0x121   : > { %v593_v53 = vpop.f32.mrf.mxu0  ;;  %v625_v54 = vpop.f32.mrf.mxu1 }
 0x122   : > { %672 = vst [vmem:[#allocation2 + $0x18] sm:$0xff] %v656_v51  ;;  %680 = vst [vmem:[#allocation2 + $0x38] sm:$0xff] %v664_v52  ;;  %v654_v57 = vadd.f32 %v593_v53, %v413_v49  ;;  %v662_v58 = vadd.f32 %v625_v54, %v421_v50 }
 0x123   : > { %v1333_v59 = vpop.f32.mrf.mxu0  ;;  %v1341_v60 = vpop.f32.mrf.mxu1 }
 0x124   : > { %670 = vst [vmem:[#allocation2] sm:$0xff] %v654_v57  ;;  %678 = vst [vmem:[#allocation2 + $0x20] sm:$0xff] %v662_v58  ;;  %v659_v63 = vadd.f32 %v1333_v59, %v418_v55  ;;  %v667_v0 = vadd.f32 %v1341_v60, %v426_v56 }
 0x125   : > { %v606_v1 = vpop.f32.mrf.mxu0  ;;  %v638_v2 = vpop.f32.mrf.mxu1 }
 0x126   : > { %675 = vst [vmem:[#allocation2 + $0x8] sm:$0xff] %v659_v63  ;;  %683 = vst [vmem:[#allocation2 + $0x78] sm:$0xff] %v667_v0  ;;  %v657_v5 = vadd.f32 %v606_v1, %v416_v61  ;;  %v665_v6 = vadd.f32 %v638_v2, %v424_v62 }
 0x127   : > { %v1334_v7 = vpop.f32.mrf.mxu0  ;;  %v1342_v8 = vpop.f32.mrf.mxu1 }
 0x128   : > { %673 = vst [vmem:[#allocation2 + $0x50] sm:$0xff] %v657_v5  ;;  %681 = vst [vmem:[#allocation2 + $0x60] sm:$0xff] %v665_v6  ;;  %v660_v11 = vadd.f32 %v1334_v7, %v419_v3  ;;  %v668_v12 = vadd.f32 %v1342_v8, %v427_v4  ;;  %688 = sbr.rel (%p1218_p13) target bundleno = 315 (0x13b), region = 89 }
 0x129   : > { %v609_v13 = vpop.f32.mrf.mxu0  ;;  %v641_v14 = vpop.f32.mrf.mxu1 }
 0x12a   : > { %676 = vst [vmem:[#allocation2 + $0x48] sm:$0xff] %v660_v11  ;;  %684 = vst [vmem:[#allocation2 + $0x28] sm:$0xff] %v668_v12  ;;  %v658_v15 = vadd.f32 %v609_v13, %v417_v9  ;;  %v666_v16 = vadd.f32 %v641_v14, %v425_v10 }
 0x12c   : > { %674 = vst [vmem:[#allocation2 + $0x68] sm:$0xff] %v658_v15  ;;  %682 = vst [vmem:[#allocation2 + $0x70] sm:$0xff] %v666_v16 }
 0x12d   : > { %v689_v17 = vld [vmem:[#allocation2 + $0x30] sm:$0xff]  ;;  %v1225_v18 = vld [vmem:[%s1697_s8] sm:$0xff]   ;;  %v691_v22 = vld [vmem:[#allocation2 + $0x58] sm:$0xff] }
 0x12e   : > { %v690_v19 = vld [vmem:[#allocation2] sm:$0xff]  ;;  %v1226_v20 = vunpack.c.l.bf16 %v1225_v18  ;;  %v1227_v21 = vunpack.c.h.bf16 %v1225_v18  ;;  %v1256_v23 = vld [vmem:[%s1697_s8 + $0x8] sm:$0xff]   ;;  %v692_v24 = vld [vmem:[#allocation2 + $0x18] sm:$0xff] }
 0x12f   : > { %v1230_v25 = vunpack.c.l.bf16 %v1256_v23  ;;  %v1231_v26 = vunpack.c.h.bf16 %v1256_v23  ;;  %v693_v27 = vld [vmem:[#allocation2 + $0x50] sm:$0xff]  ;;  %v695_v34 = vld [vmem:[#allocation2 + $0x8] sm:$0xff]  ;;  %v1258_v35 = vld [vmem:[%s1697_s8 + $0x18] sm:$0xff]  }
 0x130   : > { %v1257_v28 = vld [vmem:[%s1697_s8 + $0x10] sm:$0xff]   ;;  %v737_v30 = vadd.f32 %v1226_v20, %v689_v17  ;;  %v738_v31 = vadd.f32 %v1227_v21, %v690_v19  ;;  %v1238_v39 = vunpack.c.l.bf16 %v1258_v35  ;;  %v1239_v40 = vunpack.c.h.bf16 %v1258_v35  ;;  %v697_v41 = vld [vmem:[#allocation2 + $0x40] sm:$0xff]  ;;  %v1260_v49 = vld [vmem:[%s1697_s8 + $0x28] sm:$0xff]  }
 0x131   : > { %v1234_v32 = vunpack.c.l.bf16 %v1257_v28  ;;  %v1235_v33 = vunpack.c.h.bf16 %v1257_v28  ;;  %v696_v36 = vld [vmem:[#allocation2 + $0x48] sm:$0xff]  ;;  %v739_v37 = vadd.f32 %v1230_v25, %v691_v22  ;;  %v740_v38 = vadd.f32 %v1231_v26, %v692_v24  ;;  %v1259_v42 = vld [vmem:[%s1697_s8 + $0x20] sm:$0xff]   ;;  %v699_v48 = vld [vmem:[#allocation2 + $0x10] sm:$0xff] }
 0x132   : > { %v698_v43 = vld [vmem:[#allocation2 + $0x20] sm:$0xff]  ;;  %753 = vst [vmem:[#allocation2 + $0x30] sm:$0xff] %v737_v30  ;;  %754 = vst [vmem:[#allocation2] sm:$0xff] %v738_v31  ;;  %v1242_v46 = vunpack.c.l.bf16 %v1259_v42  ;;  %v1243_v47 = vunpack.c.h.bf16 %v1259_v42  ;;  %v700_v50 = vld [vmem:[#allocation2 + $0x38] sm:$0xff]  ;;  %v743_v51 = vadd.f32 %v1238_v39, %v695_v34  ;;  %v744_v52 = vadd.f32 %v1239_v40, %v696_v36 }
 0x133   : > { %v694_v29 = vld [vmem:[#allocation2 + $0x68] sm:$0xff]  ;;  %v741_v44 = vadd.f32 %v1234_v32, %v693_v27  ;;  %755 = vst [vmem:[#allocation2 + $0x58] sm:$0xff] %v739_v37  ;;  %756 = vst [vmem:[#allocation2 + $0x18] sm:$0xff] %v740_v38  ;;  %v1246_v53 = vunpack.c.l.bf16 %v1260_v49  ;;  %v1247_v54 = vunpack.c.h.bf16 %v1260_v49  ;;  %v701_v55 = vld [vmem:[#allocation2 + $0x60] sm:$0xff] }
 0x134   : > { %v742_v45 = vadd.f32 %v1235_v33, %v694_v29  ;;  %v1261_v56 = vld [vmem:[%s1697_s8 + $0x30] sm:$0xff]   ;;  %v745_v58 = vadd.f32 %v1242_v46, %v697_v41  ;;  %v746_v59 = vadd.f32 %v1243_v47, %v698_v43  ;;  %v703_v62 = vld [vmem:[#allocation2 + $0x78] sm:$0xff]  ;;  %v704_v0 = vld [vmem:[#allocation2 + $0x28] sm:$0xff]  ;;  %759 = vst [vmem:[#allocation2 + $0x8] sm:$0xff] %v743_v51 }
 0x135   : > { %v702_v57 = vld [vmem:[#allocation2 + $0x70] sm:$0xff]  ;;  %757 = vst [vmem:[#allocation2 + $0x50] sm:$0xff] %v741_v44  ;;  %v1250_v60 = vunpack.c.l.bf16 %v1261_v56  ;;  %v1251_v61 = vunpack.c.h.bf16 %v1261_v56  ;;  %v1262_v63 = vld [vmem:[%s1697_s8 + $0x38] sm:$0xff]   ;;  %760 = vst [vmem:[#allocation2 + $0x48] sm:$0xff] %v744_v52  ;;  %v747_v1 = vadd.f32 %v1246_v53, %v699_v48  ;;  %v748_v2 = vadd.f32 %v1247_v54, %v700_v50 }
 0x136   : > { %758 = vst [vmem:[#allocation2 + $0x68] sm:$0xff] %v742_v45  ;;  %v1254_v3 = vunpack.c.l.bf16 %v1262_v63  ;;  %v1255_v4 = vunpack.c.h.bf16 %v1262_v63  ;;  %761 = vst [vmem:[#allocation2 + $0x40] sm:$0xff] %v745_v58 }
 0x137   : > { %762 = vst [vmem:[#allocation2 + $0x20] sm:$0xff] %v746_v59  ;;  %v749_v5 = vadd.f32 %v1250_v60, %v701_v55  ;;  %v750_v6 = vadd.f32 %v1251_v61, %v702_v57  ;;  %763 = vst [vmem:[#allocation2 + $0x10] sm:$0xff] %v747_v1 }
 0x138   : > { %764 = vst [vmem:[#allocation2 + $0x38] sm:$0xff] %v748_v2  ;;  %v751_v7 = vadd.f32 %v1254_v3, %v703_v62  ;;  %v752_v8 = vadd.f32 %v1255_v4, %v704_v0 }
 0x139   : > { %765 = vst [vmem:[#allocation2 + $0x60] sm:$0xff] %v749_v5  ;;  %766 = vst [vmem:[#allocation2 + $0x70] sm:$0xff] %v750_v6 }
 0x13a   : > { %767 = vst [vmem:[#allocation2 + $0x78] sm:$0xff] %v751_v7  ;;  %768 = vst [vmem:[#allocation2 + $0x28] sm:$0xff] %v752_v8 }
 0x13b PF: > { %p1219_p0 = scmp.ne.s32.totalorder %s1561_s20, 1 }
 0x13d   : > { %772 = sbr.rel (%p1219_p0) target bundleno = 566 (0x236), region = 93 }
 0x142   : > { %v804_v9 = vld [vmem:[%s1845_s2 + $0x78] sm:$0xff]  ;;  %v803_v10 = vld [vmem:[%s1845_s2 + $0x70] sm:$0xff]  ;;  %v802_v11 = vld [vmem:[%s1845_s2 + $0x68] sm:$0xff]  ;;  %v1580_v37 = vmov 0  }
 0x143   : > { %1343 = vmatprep.subr.mxu0 %v804_v9  ;;  %1415 = vmatprep.subr.mxu1 %v804_v9  ;;  %v801_v12 = vld [vmem:[%s1845_s2 + $0x60] sm:$0xff]  ;;  %v800_v13 = vld [vmem:[%s1845_s2 + $0x58] sm:$0xff]  ;;  %v799_v14 = vld [vmem:[%s1845_s2 + $0x50] sm:$0xff] }
 0x144   : > { %1344 = vmatpush3.msra.mxu0 %v804_v9  ;;  %1431 = vmatpush3.msra.mxu1 %v804_v9  ;;  %v798_v15 = vld [vmem:[%s1845_s2 + $0x48] sm:$0xff]  ;;  %v797_v16 = vld [vmem:[%s1845_s2 + $0x40] sm:$0xff]  ;;  %v796_v17 = vld [vmem:[%s1845_s2 + $0x38] sm:$0xff] }
 0x145   : > { %1345 = vmatprep.subr.mxu0 %v803_v10  ;;  %1416 = vmatprep.subr.mxu1 %v803_v10  ;;  %v795_v18 = vld [vmem:[%s1845_s2 + $0x30] sm:$0xff]  ;;  %v794_v19 = vld [vmem:[%s1845_s2 + $0x28] sm:$0xff]  ;;  %v793_v20 = vld [vmem:[%s1845_s2 + $0x20] sm:$0xff] }
 0x146   : > { %1346 = vmatpush3.msra.mxu0 %v803_v10  ;;  %1432 = vmatpush3.msra.mxu1 %v803_v10  ;;  %v792_v21 = vld [vmem:[%s1845_s2 + $0x18] sm:$0xff]  ;;  %v791_v22 = vld [vmem:[%s1845_s2 + $0x10] sm:$0xff]  ;;  %v790_v23 = vld [vmem:[%s1845_s2 + $0x8] sm:$0xff] }
 0x147   : > { %1347 = vmatprep.subr.mxu0 %v802_v11  ;;  %1417 = vmatprep.subr.mxu1 %v802_v11  ;;  %v789_v24 = vld [vmem:[%s1845_s2] sm:$0xff]  ;;  %v773_v25 = vld [vmem:[#allocation2 + $0x30] sm:$0xff]  ;;  %v775_v29 = vld [vmem:[#allocation2 + $0x58] sm:$0xff] }
 0x148   : > { %1348 = vmatpush3.msra.mxu0 %v802_v11  ;;  %1433 = vmatpush3.msra.mxu1 %v802_v11  ;;  %v781_v26 = vld [vmem:[#allocation2 + $0x40] sm:$0xff]  ;;  %v783_v30 = vld [vmem:[#allocation2 + $0x10] sm:$0xff]  ;;  %v776_v33 = vld [vmem:[#allocation2 + $0x18] sm:$0xff] }
 0x149   : > { %1349 = vmatprep.subr.mxu0 %v801_v12  ;;  %1418 = vmatprep.subr.mxu1 %v801_v12  ;;  %v774_v27 = vld [vmem:[#allocation2] sm:$0xff]  ;;  %v807_v31 = vld [vmem:[%s1702_s12 + $0x10] sm:$0xff]  ;;  %v784_v34 = vld [vmem:[#allocation2 + $0x38] sm:$0xff] }
 0x14a   : > { %1350 = vmatpush3.msra.mxu0 %v801_v12  ;;  %1434 = vmatpush3.msra.mxu1 %v801_v12  ;;  %v782_v28 = vld [vmem:[#allocation2 + $0x20] sm:$0xff]  ;;  %v777_v35 = vld [vmem:[#allocation2 + $0x50] sm:$0xff]  ;;  %v808_v38 = vld [vmem:[%s1702_s12 + $0x18] sm:$0xff] }
 0x14b   : > { %1351 = vmatprep.subr.mxu0 %v800_v13  ;;  %1419 = vmatprep.subr.mxu1 %v800_v13  ;;  %v805_v32 = vld [vmem:[%s1702_s12] sm:$0xff]  ;;  %v806_v39 = vld [vmem:[%s1702_s12 + $0x8] sm:$0xff]  ;;  %v786_v41 = vld [vmem:[#allocation2 + $0x70] sm:$0xff] }
 0x14c   : > { %1352 = vmatpush3.msra.mxu0 %v800_v13  ;;  %1435 = vmatpush3.msra.mxu1 %v800_v13  ;;  %v785_v36 = vld [vmem:[#allocation2 + $0x60] sm:$0xff]  ;;  %v778_v40 = vld [vmem:[#allocation2 + $0x68] sm:$0xff]  ;;  %v787_v43 = vld [vmem:[#allocation2 + $0x78] sm:$0xff] }
 0x14d   : > { %1353 = vmatprep.subr.mxu0 %v799_v14  ;;  %1420 = vmatprep.subr.mxu1 %v799_v14  ;;  %v779_v42 = vld [vmem:[#allocation2 + $0x8] sm:$0xff]  ;;  %v809_v45 = vld [vmem:[%s1702_s12 + $0x20] sm:$0xff]  ;;  %v812_v48 = vld [vmem:[%s1702_s12 + $0x38] sm:$0xff] }
 0x14e   : > { %1354 = vmatpush3.msra.mxu0 %v799_v14  ;;  %1436 = vmatpush3.msra.mxu1 %v799_v14  ;;  %v810_v44 = vld [vmem:[%s1702_s12 + $0x28] sm:$0xff]  ;;  %v811_v49 = vld [vmem:[%s1702_s12 + $0x30] sm:$0xff]  ;;  %v813_v51 = vld [vmem:[%s1702_s12 + $0x40] sm:$0xff] }
 0x14f   : > { %1355 = vmatprep.subr.mxu0 %v798_v15  ;;  %1421 = vmatprep.subr.mxu1 %v798_v15  ;;  %v780_v46 = vld [vmem:[#allocation2 + $0x48] sm:$0xff]  ;;  %v816_v52 = vld [vmem:[%s1702_s12 + $0x58] sm:$0xff]  ;;  %v815_v53 = vld [vmem:[%s1702_s12 + $0x50] sm:$0xff] }
 0x150   : > { %1356 = vmatpush3.msra.mxu0 %v798_v15  ;;  %1437 = vmatpush3.msra.mxu1 %v798_v15  ;;  %v788_v47 = vld [vmem:[#allocation2 + $0x28] sm:$0xff]  ;;  %v817_v55 = vld [vmem:[%s1702_s12 + $0x60] sm:$0xff]  ;;  %v820_v56 = vld [vmem:[%s1702_s12 + $0x78] sm:$0xff] }
 0x151   : > { %1357 = vmatprep.subr.mxu0 %v797_v16  ;;  %1422 = vmatprep.subr.mxu1 %v797_v16  ;;  %v814_v50 = vld [vmem:[%s1702_s12 + $0x48] sm:$0xff]  ;;  %v819_v57 = vld [vmem:[%s1702_s12 + $0x70] sm:$0xff]  ;;  %v1220_v5 = vld [vmem:[%s1846_s3] ss:$0 sm:$0xff] }
 0x152   : > { %1358 = vmatpush3.msra.mxu0 %v797_v16  ;;  %1438 = vmatpush3.msra.mxu1 %v797_v16  ;;  %v818_v54 = vld [vmem:[%s1702_s12 + $0x68] sm:$0xff] }
 0x153   : > { %1359 = vmatprep.subr.mxu0 %v796_v17  ;;  %1423 = vmatprep.subr.mxu1 %v796_v17 }
 0x154   : > { %1360 = vmatpush3.msra.mxu0 %v796_v17  ;;  %1439 = vmatpush3.msra.mxu1 %v796_v17 }
 0x155   : > { %1361 = vmatprep.subr.mxu0 %v795_v18  ;;  %1424 = vmatprep.subr.mxu1 %v795_v18 }
 0x156   : > { %1362 = vmatpush3.msra.mxu0 %v795_v18  ;;  %1440 = vmatpush3.msra.mxu1 %v795_v18 }
 0x157   : > { %1363 = vmatprep.subr.mxu0 %v794_v19  ;;  %1425 = vmatprep.subr.mxu1 %v794_v19 }
 0x158   : > { %1364 = vmatpush3.msra.mxu0 %v794_v19  ;;  %1441 = vmatpush3.msra.mxu1 %v794_v19 }
 0x159   : > { %1365 = vmatprep.subr.mxu0 %v793_v20  ;;  %1426 = vmatprep.subr.mxu1 %v793_v20 }
 0x15a   : > { %1366 = vmatpush3.msra.mxu0 %v793_v20  ;;  %1442 = vmatpush3.msra.mxu1 %v793_v20 }
 0x15b   : > { %1367 = vmatprep.subr.mxu0 %v792_v21  ;;  %1427 = vmatprep.subr.mxu1 %v792_v21 }
 0x15c   : > { %1368 = vmatpush3.msra.mxu0 %v792_v21  ;;  %1443 = vmatpush3.msra.mxu1 %v792_v21 }
 0x15d   : > { %1369 = vmatprep.subr.mxu0 %v791_v22  ;;  %1428 = vmatprep.subr.mxu1 %v791_v22 }
 0x15e   : > { %1370 = vmatpush3.msra.mxu0 %v791_v22  ;;  %1444 = vmatpush3.msra.mxu1 %v791_v22 }
 0x15f   : > { %1371 = vmatprep.subr.mxu0 %v790_v23  ;;  %1429 = vmatprep.subr.mxu1 %v790_v23 }
 0x160   : > { %1372 = vmatpush3.msra.mxu0 %v790_v23  ;;  %1445 = vmatpush3.msra.mxu1 %v790_v23 }
 0x161   : > { %1373 = vmatprep.subr.mxu0 %v789_v24  ;;  %1430 = vmatprep.subr.mxu1 %v789_v24 }
 0x162   : > { %1374 = vmatpush3.msra.mxu0 %v789_v24  ;;  %1446 = vmatpush3.msra.mxu1 %v789_v24 }
 0x163   : > { %1375 = vmatprep.mubr.f32.mxu0 %v773_v25  ;;  %1387 = vmatprep.mubr.f32.mxu1 %v781_v26 }
 0x164   : > { %1376 = vmatmul.mubr.f32.vlgmr.msra.gmra.mxu0 %v774_v27  ;;  %1388 = vmatmul.mubr.f32.vlgmr.msra.gmra.mxu1 %v782_v28 }
 0x165   : > { %1378 = vmatprep.mubr.f32.mxu0 %v775_v29  ;;  %1390 = vmatprep.mubr.f32.mxu1 %v783_v30 }
 0x166   : > { %1522 = vset.pattern.permute.xlu1 %v1580_v37  ;;  %1521 = vset.pattern.permute.xlu0 %v1580_v37 }
 0x167   : > { %834 = vperm.xlu1 %1522, %v807_v31   ;;  %824 = vperm.xlu0 %1521, %v805_v32  }
 0x168   : > { %1379 = vmatmul.mubr.f32.gmra.mxu0 %v776_v33  ;;  %1391 = vmatmul.mubr.f32.gmra.mxu1 %v784_v34 }
 0x169   : > { %1381 = vmatprep.mubr.f32.mxu0 %v777_v35  ;;  %1393 = vmatprep.mubr.f32.mxu1 %v785_v36 }
 0x16b   : > { %839 = vperm.xlu1 %1522, %v808_v38   ;;  %829 = vperm.xlu0 %1521, %v806_v39  }
 0x16c   : > { %1382 = vmatmul.mubr.f32.gmra.mxu0 %v778_v40  ;;  %1394 = vmatmul.mubr.f32.gmra.mxu1 %v786_v41 }
 0x16d   : > { %1384 = vmatprep.mubr.f32.mxu0 %v779_v42  ;;  %1396 = vmatprep.mubr.f32.mxu1 %v787_v43 }
 0x16f   : > { %849 = vperm.xlu1 %1522, %v810_v44   ;;  %844 = vperm.xlu0 %1521, %v809_v45  }
 0x170   : > { %1385 = vmatmul.mubr.f32.gmra.mxu0 %v780_v46  ;;  %1397 = vmatmul.mubr.f32.gmra.mxu1 %v788_v47 }
 0x173   : > { %859 = vperm.xlu1 %1522, %v812_v48   ;;  %854 = vperm.xlu0 %1521, %v811_v49  }
 0x177   : > { %869 = vperm.xlu1 %1522, %v814_v50   ;;  %864 = vperm.xlu0 %1521, %v813_v51  }
 0x17b   : > { %879 = vperm.xlu1 %1522, %v816_v52   ;;  %874 = vperm.xlu0 %1521, %v815_v53  }
 0x17f   : > { %889 = vperm.xlu1 %1522, %v818_v54   ;;  %884 = vperm.xlu0 %1521, %v817_v55  }
 0x183   : > { %899 = vperm.xlu1 %1522, %v820_v56   ;;  %894 = vperm.xlu0 %1521, %v819_v57  }
 0x1e2   : > { %v835_v58 = vpop.permute.xlu1 %834  ;;  %v825_v59 = vpop.permute.xlu0 %824 }
 0x1e3   : > { %v908_v11 = vmul.f32 %v1220_v5, %v825_v59  ;;  %v910_v25 = vmul.f32 %v1220_v5, %v835_v58 }
 0x1e6   : > { %v840_v60 = vpop.permute.xlu1 %839  ;;  %v830_v61 = vpop.permute.xlu0 %829 }
 0x1e7   : > { %v909_v7 = vmul.f32 %v1220_v5, %v830_v61  ;;  %v911_v18 = vmul.f32 %v1220_v5, %v840_v60 }
 0x1ea   : > { %v850_v62 = vpop.permute.xlu1 %849  ;;  %v845_v63 = vpop.permute.xlu0 %844 }
 0x1eb   : > { %v913_v31 = vmul.f32 %v1220_v5, %v850_v62  ;;  %v912_v38 = vmul.f32 %v1220_v5, %v845_v63 }
 0x1ee   : > { %v860_v0 = vpop.permute.xlu1 %859  ;;  %v855_v1 = vpop.permute.xlu0 %854 }
 0x1ef   : > { %v915_v45 = vmul.f32 %v1220_v5, %v860_v0  ;;  %v914_v51 = vmul.f32 %v1220_v5, %v855_v1 }
 0x1f2   : > { %v870_v2 = vpop.permute.xlu1 %869  ;;  %v865_v3 = vpop.permute.xlu0 %864 }
 0x1f3   : > { %v917_v8 = vmul.f32 %v1220_v5, %v870_v2  ;;  %v916_v12 = vmul.f32 %v1220_v5, %v865_v3 }
 0x1f6   : > { %v880_v4 = vpop.permute.xlu1 %879  ;;  %v875_v6 = vpop.permute.xlu0 %874 }
 0x1f7   : > { %v919_v19 = vmul.f32 %v1220_v5, %v880_v4  ;;  %v918_v26 = vmul.f32 %v1220_v5, %v875_v6 }
 0x1fa   : > { %v890_v13 = vpop.permute.xlu1 %889  ;;  %v885_v20 = vpop.permute.xlu0 %884 }
 0x1fb   : > { %v921_v32 = vmul.f32 %v1220_v5, %v890_v13  ;;  %v920_v39 = vmul.f32 %v1220_v5, %v885_v20 }
 0x1fe   : > { %v900_v33 = vpop.permute.xlu1 %899  ;;  %v895_v40 = vpop.permute.xlu0 %894 }
 0x1ff   : > { %v923_v46 = vmul.f32 %v1220_v5, %v900_v33  ;;  %v922_v52 = vmul.f32 %v1220_v5, %v895_v40 }
 0x224   : > { %v1377_v9 = vpop.f32.mrf.mxu0  ;;  %v1389_v10 = vpop.f32.mrf.mxu1 }
 0x225   : > { %v996_v14 = vadd.f32 %v1377_v9, %v909_v7  ;;  %v1036_v15 = vadd.f32 %v1389_v10, %v917_v8 }
 0x226   : > { %v990_v16 = vpop.f32.mrf.mxu0  ;;  %v1030_v17 = vpop.f32.mrf.mxu1 }
 0x227   : > { %1070 = vst [vmem:[%s1707_s14 + $0x8] sm:$0xff] %v996_v14  ;;  %1078 = vst [vmem:[%s1707_s14 + $0x48] sm:$0xff] %v1036_v15  ;;  %v991_v21 = vadd.f32 %v990_v16, %v908_v11  ;;  %v1031_v22 = vadd.f32 %v1030_v17, %v916_v12 }
 0x228   : > { %v1380_v23 = vpop.f32.mrf.mxu0  ;;  %v1392_v24 = vpop.f32.mrf.mxu1 }
 0x229   : > { %1069 = vst [vmem:[%s1707_s14] sm:$0xff] %v991_v21  ;;  %1077 = vst [vmem:[%s1707_s14 + $0x40] sm:$0xff] %v1031_v22  ;;  %v1006_v27 = vadd.f32 %v1380_v23, %v911_v18  ;;  %v1046_v28 = vadd.f32 %v1392_v24, %v919_v19 }
 0x22a   : > { %v1000_v29 = vpop.f32.mrf.mxu0  ;;  %v1040_v30 = vpop.f32.mrf.mxu1 }
 0x22b   : > { %1072 = vst [vmem:[%s1707_s14 + $0x18] sm:$0xff] %v1006_v27  ;;  %1080 = vst [vmem:[%s1707_s14 + $0x58] sm:$0xff] %v1046_v28  ;;  %v1001_v34 = vadd.f32 %v1000_v29, %v910_v25  ;;  %v1041_v35 = vadd.f32 %v1040_v30, %v918_v26 }
 0x22c   : > { %v1383_v36 = vpop.f32.mrf.mxu0  ;;  %v1395_v37 = vpop.f32.mrf.mxu1 }
 0x22d   : > { %1071 = vst [vmem:[%s1707_s14 + $0x10] sm:$0xff] %v1001_v34  ;;  %1079 = vst [vmem:[%s1707_s14 + $0x50] sm:$0xff] %v1041_v35  ;;  %v1016_v41 = vadd.f32 %v1383_v36, %v913_v31  ;;  %v1056_v42 = vadd.f32 %v1395_v37, %v921_v32 }
 0x22e   : > { %v1010_v43 = vpop.f32.mrf.mxu0  ;;  %v1050_v44 = vpop.f32.mrf.mxu1 }
 0x22f   : > { %1074 = vst [vmem:[%s1707_s14 + $0x28] sm:$0xff] %v1016_v41  ;;  %1082 = vst [vmem:[%s1707_s14 + $0x68] sm:$0xff] %v1056_v42  ;;  %v1011_v47 = vadd.f32 %v1010_v43, %v912_v38  ;;  %v1051_v48 = vadd.f32 %v1050_v44, %v920_v39 }
 0x230   : > { %v1386_v49 = vpop.f32.mrf.mxu0  ;;  %v1398_v50 = vpop.f32.mrf.mxu1 }
 0x231   : > { %1073 = vst [vmem:[%s1707_s14 + $0x20] sm:$0xff] %v1011_v47  ;;  %1081 = vst [vmem:[%s1707_s14 + $0x60] sm:$0xff] %v1051_v48  ;;  %v1026_v53 = vadd.f32 %v1386_v49, %v915_v45  ;;  %v1066_v54 = vadd.f32 %v1398_v50, %v923_v46 }
 0x232   : > { %v1020_v55 = vpop.f32.mrf.mxu0  ;;  %v1060_v56 = vpop.f32.mrf.mxu1 }
 0x233   : > { %1076 = vst [vmem:[%s1707_s14 + $0x38] sm:$0xff] %v1026_v53  ;;  %1084 = vst [vmem:[%s1707_s14 + $0x78] sm:$0xff] %v1066_v54  ;;  %v1021_v57 = vadd.f32 %v1020_v55, %v914_v51  ;;  %v1061_v58 = vadd.f32 %v1060_v56, %v922_v52 }
 0x235   : > { %1075 = vst [vmem:[%s1707_s14 + $0x30] sm:$0xff] %v1021_v57  ;;  %1083 = vst [vmem:[%s1707_s14 + $0x70] sm:$0xff] %v1061_v58 }
 0x236 PF: > { %s15_s24 = sadd.s32 1, %s1577_s24   ;;  %s1849_s18 = smov %s1557_s19 }
 0x237   : > { %p12_p1 = scmp.ge.s32.totalorder %s15_s24, 6   ;;  %s1850_s19 = smov %s1662_s6 }
 0x238   : > { %s1851_s20 = smov %s1569_s22  ;;  %s1852_s21 = smov %s1573_s23 }
 0x239   : > { %s1853_s22 = smov %s1856_s25  ;;  %s1854_s23 = smov %s1860_s26 }
 0x23a   :  { %14 = sbr.rel (!%p12_p1) target bundleno = 4 (0x4), region = 134 }

// kernel: gcn_forward.4
= control target key start
LH: loop header
LB: loop body
LE: loop exit
PB: predicated region body
PF: predicated region fallthrough
CT: control target
= control target key end

     0   :  { %s1770_s18 = smov 0   ;;  %s1772_s19 = smov 0   ;;  %s2015_s0 = inlined_call_operand.vmem [shape: bf16[256,256], index: 0, kind: input, shape index: {}]   ;;  %s2016_s1 = inlined_call_operand.vmem [shape: bf16[256,128], index: 1, kind: input, shape index: {}]   ;;  %s2017_s2 = inlined_call_operand.vmem [shape: f32[128,128], index: 2, kind: input, shape index: {}]   ;;  %s2018_s3 = inlined_call_operand.vmem [shape: f32[1,128], index: 3, kind: input, shape index: {}]   ;;  %s2019_s4 = inlined_call_operand.vmem [shape: f32[256,1], index: 4, kind: input, shape index: {}]   ;;  %s2020_s5 = inlined_call_operand.vmem [shape: bf16[256,128], index: 5, kind: output, shape index: {}]  }
   0x1   :  { %s1774_s20 = smov 0   ;;  %s1776_s21 = smov 0  }
   0x2   :  { %s1778_s22 = smov 0   ;;  %s1780_s23 = smov 0  }
   0x3   :  { %s1782_s24 = smov 0  }
   0x4 LB: > { %s24_s25 = sadd.s32 1, %s1728_s22  ;;  %s27_s26 = sadd.s32 1, %s1732_s23  ;;  %s1736_s24 = sphi %s1782_s24, %s15_s24   ;;  %s1732_s23 = sphi %s1780_s23, %s2026_s23   ;;  %s1728_s22 = sphi %s1778_s22, %s2025_s22   ;;  %s1724_s21 = sphi %s1776_s21, %s2024_s21   ;;  %s1720_s20 = sphi %s1774_s20, %s2023_s20   ;;  %s1716_s19 = sphi %s1772_s19, %s2022_s19   ;;  %s1712_s18 = sphi %s1770_s18, %s2021_s18  }
   0x5   : > { %p25_p0 = scmp.ge.s32.totalorder %s24_s25, 2  ;;  %p43_p1 = scmp.ne.s32.totalorder %s1716_s19, %s1712_s18 }
   0x6   : > { %p44_p2 = scmp.eq.s32.totalorder %s1736_s24, 0  ;;  %s36_s30 = sadd.s32 1, %s1716_s19 }
   0x7   : > { %s2028_s25 = smov (%p25_p0, %s24_s25), 0  ;;  %s2030_s26 = smov (!%p25_p0, %s27_s26), %s1732_s23 }
   0x8   : > { %p45_p3 = por %p44_p2, %p43_p1  ;;  %p29_p4 = scmp.ge.s32.totalorder %s2030_s26, 2 }
   0x9   : > { %s32_s27 = ssub.s32 %s1728_s22, %s2028_s25  ;;  %p1268_p6 = scmp.ge.s32.totalorder %s1736_s24, 4 }
   0xa   : > { %s2032_s26 = smov (%p29_p4, %s2030_s26), 0 }
   0xb   : > { %s31_s28 = ssub.s32 %s1732_s23, %s2032_s26  ;;  %195 = sbr.rel (%p1268_p6) target bundleno = 32 (0x20), region = 24 }
   0xc   : > { %s33_s29 = sor.u32 %s32_s27, %s31_s28 }
   0xd   : > { %p34_p5 = scmp.eq.s32.totalorder %s33_s29, 0 }
   0xf   : > { %s1821_s6 = scalar_select %p34_p5, %s1716_s19, %s36_s30  }
  0x10   : > { %198 = sbr.rel (!%p45_p3) target bundleno = 32 (0x20), region = 28  ;;  %s200_s7 = sand.u32 (%p45_p3), 1, %s1716_s19  }
  0x11   : > { %s1319_s8 = sshll.u32 (%p45_p3), %s1732_s23, 5  ;;  %s1269_s9 = sshll.u32 (%p45_p3), %s200_s7, 6 }
  0x12   : > { %s205_s10 = sadd.s32 (%p45_p3), %s1728_s22, %s1319_s8  ;;  %s202_s15 = scalar_lea.vmem (%p45_p3), [#allocation3], %s1269_s9 }
  0x13   : > { %s1272_s11 = sshll.u32 (%p45_p3), %s205_s10, 2 }
  0x14   : > { %s1830_s14 = scalar_lea.vmem (%p45_p3), %s2015_s0, %s1272_s11 }
  0x15   : > { %v224_v0 = vld [vmem:[%s1830_s14] sm:$0xf]  ;;  %v226_v1 = vld [vmem:[%s1830_s14 + $0x8] sm:$0xf]  ;;  %v228_v2 = vld [vmem:[%s1830_s14 + $0x10] sm:$0xf] }
  0x16   : > { %225 = vst [vmem:[%s202_s15] sm:$0xf] %v224_v0  ;;  %227 = vst [vmem:[%s202_s15 + $0x4] sm:$0xf] %v226_v1  ;;  %v230_v3 = vld [vmem:[%s1830_s14 + $0x18] sm:$0xf] }
  0x17   : > { %229 = vst [vmem:[%s202_s15 + $0x8] sm:$0xf] %v228_v2  ;;  %v232_v4 = vld [vmem:[%s1830_s14 + $0x20] sm:$0xf]  ;;  %v234_v5 = vld [vmem:[%s1830_s14 + $0x28] sm:$0xf] }
  0x18   : > { %231 = vst [vmem:[%s202_s15 + $0xc] sm:$0xf] %v230_v3  ;;  %233 = vst [vmem:[%s202_s15 + $0x10] sm:$0xf] %v232_v4  ;;  %v236_v6 = vld [vmem:[%s1830_s14 + $0x30] sm:$0xf] }
  0x19   : > { %235 = vst [vmem:[%s202_s15 + $0x14] sm:$0xf] %v234_v5  ;;  %v238_v7 = vld [vmem:[%s1830_s14 + $0x38] sm:$0xf]  ;;  %v240_v8 = vld [vmem:[%s1830_s14 + $0x40] sm:$0xf] }
  0x1a   : > { %237 = vst [vmem:[%s202_s15 + $0x18] sm:$0xf] %v236_v6  ;;  %239 = vst [vmem:[%s202_s15 + $0x1c] sm:$0xf] %v238_v7  ;;  %v242_v9 = vld [vmem:[%s1830_s14 + $0x48] sm:$0xf] }
  0x1b   : > { %241 = vst [vmem:[%s202_s15 + $0x20] sm:$0xf] %v240_v8  ;;  %v244_v10 = vld [vmem:[%s1830_s14 + $0x50] sm:$0xf]  ;;  %v246_v11 = vld [vmem:[%s1830_s14 + $0x58] sm:$0xf] }
  0x1c   : > { %243 = vst [vmem:[%s202_s15 + $0x24] sm:$0xf] %v242_v9  ;;  %245 = vst [vmem:[%s202_s15 + $0x28] sm:$0xf] %v244_v10  ;;  %v248_v12 = vld [vmem:[%s1830_s14 + $0x60] sm:$0xf] }
  0x1d   : > { %247 = vst [vmem:[%s202_s15 + $0x2c] sm:$0xf] %v246_v11  ;;  %v250_v13 = vld [vmem:[%s1830_s14 + $0x68] sm:$0xf]  ;;  %v252_v14 = vld [vmem:[%s1830_s14 + $0x70] sm:$0xf] }
  0x1e   : > { %249 = vst [vmem:[%s202_s15 + $0x30] sm:$0xf] %v248_v12  ;;  %251 = vst [vmem:[%s202_s15 + $0x34] sm:$0xf] %v250_v13  ;;  %v254_v15 = vld [vmem:[%s1830_s14 + $0x78] sm:$0xf] }
  0x1f   : > { %253 = vst [vmem:[%s202_s15 + $0x38] sm:$0xf] %v252_v14  ;;  %255 = vst [vmem:[%s202_s15 + $0x3c] sm:$0xf] %v254_v15 }
  0x20 PF: > { %p1273_p7 = scmp.ge.s32.totalorder %s1736_s24, 1  ;;  %p328_p8 = scmp.lt.s32.totalorder %s1736_s24, 5 }
  0x22   : > { %p329_p9 = pnand %p1273_p7, %p328_p8 }
  0x23   : > { %s335_s16 = sand.u32 (!%p329_p9), 1, %s1712_s18   ;;  %s1275_s17 = sshll.u32 (!%p329_p9), %s1720_s20, 4 }
  0x24   : > { %332 = sbr.rel (%p329_p9) target bundleno = 571 (0x23b), region = 77  ;;  %s1274_s27 = sshll.u32 (!%p329_p9), %s335_s16, 6 }
  0x25   : > { %p374_p10 = scmp.lt.s32.totalorder (!%p329_p9), %s1275_s17, 31  ;;  %s1277_s28 = sshll.u32 (!%p329_p9), %s1724_s21, 4 }
  0x26   : > { %p380_p11 = scmp.lt.s32.totalorder (!%p329_p9), %s1277_s28, 31  ;;  %s1868_s16 = scalar_lea.vmem (!%p329_p9), [#allocation3], %s1274_s27 }
  0x27   : > { %p1281_p12 = scmp.ne.s32.totalorder (!%p329_p9), %s1720_s20, 0 }
  0x29   : > { %s2034_s17 = smov (!%p374_p10, %s1275_s17), 31  ;;  %s2036_s28 = smov (!%p380_p11, %s1277_s28), 31 }
  0x2a   : > { %s1276_s29 = sshll.u32 %s2034_s17, 2  ;;  %s1278_s9 = sshll.u32 %s2036_s28, 3 }
  0x2b   : > { %s1856_s8 = scalar_lea.vmem %s2016_s1, %s1276_s29  ;;  %s1280_s10 = sshll.u32 %s2036_s28, 2 }
  0x2c   : > { %s1861_s13 = scalar_lea.vmem %s2019_s4, %s1278_s9  ;;  %s1866_s15 = scalar_lea.vmem %s2020_s5, %s1280_s10 }
  0x2d   : > { %395 = sbr.rel (%p1281_p12) target bundleno = 59 (0x3b), region = 85 }
  0x32   : > { %v1738_v16 = vmov 0.0  }
  0x33   : > { %396 = vst [vmem:[#allocation2 + $0x30] sm:$0xff] %v1738_v16  ;;  %397 = vst [vmem:[#allocation2] sm:$0xff] %v1738_v16 }
  0x34   : > { %398 = vst [vmem:[#allocation2 + $0x58] sm:$0xff] %v1738_v16  ;;  %399 = vst [vmem:[#allocation2 + $0x18] sm:$0xff] %v1738_v16 }
  0x35   : > { %400 = vst [vmem:[#allocation2 + $0x50] sm:$0xff] %v1738_v16  ;;  %401 = vst [vmem:[#allocation2 + $0x68] sm:$0xff] %v1738_v16 }
  0x36   : > { %402 = vst [vmem:[#allocation2 + $0x8] sm:$0xff] %v1738_v16  ;;  %403 = vst [vmem:[#allocation2 + $0x48] sm:$0xff] %v1738_v16 }
  0x37   : > { %404 = vst [vmem:[#allocation2 + $0x40] sm:$0xff] %v1738_v16  ;;  %405 = vst [vmem:[#allocation2 + $0x20] sm:$0xff] %v1738_v16 }
  0x38   : > { %406 = vst [vmem:[#allocation2 + $0x10] sm:$0xff] %v1738_v16  ;;  %407 = vst [vmem:[#allocation2 + $0x38] sm:$0xff] %v1738_v16 }
  0x39   : > { %408 = vst [vmem:[#allocation2 + $0x60] sm:$0xff] %v1738_v16  ;;  %409 = vst [vmem:[#allocation2 + $0x70] sm:$0xff] %v1738_v16 }
  0x3a   : > { %410 = vst [vmem:[#allocation2 + $0x78] sm:$0xff] %v1738_v16  ;;  %411 = vst [vmem:[#allocation2 + $0x28] sm:$0xff] %v1738_v16 }
  0x3b PF: > { %v1664_v17 = vld [vmem:[%s1856_s8 + $0x38] sm:$0xff]   ;;  %v1665_v18 = vld [vmem:[%s1856_s8 + $0x30] sm:$0xff]   ;;  %v1666_v19 = vld [vmem:[%s1856_s8 + $0x28] sm:$0xff]   ;;  %p1298_p13 = scmp.ne.s32.totalorder %s1720_s20, %s1724_s21 }
  0x3c   : > { %1470 = vmatprep.subr.bf16.mxu0 %v1664_v17  ;;  %1558 = vmatprep.subr.bf16.mxu1 %v1664_v17  ;;  %v1667_v20 = vld [vmem:[%s1856_s8 + $0x20] sm:$0xff]   ;;  %v1668_v23 = vld [vmem:[%s1856_s8 + $0x18] sm:$0xff]   ;;  %v1669_v24 = vld [vmem:[%s1856_s8 + $0x10] sm:$0xff]  }
  0x3d   : > { %1471 = vmatpush3.bf16.msra.mxu0 %v1664_v17  ;;  %1566 = vmatpush3.bf16.msra.mxu1 %v1664_v17  ;;  %v1672_v21 = vld [vmem:[%s1868_s16] sm:$0xff]   ;;  %v1670_v25 = vld [vmem:[%s1856_s8 + $0x8] sm:$0xff]   ;;  %v1676_v29 = vld [vmem:[%s1868_s16 + $0x10] sm:$0xff]  }
  0x3e   : > { %1472 = vmatprep.subr.bf16.mxu0 %v1665_v18  ;;  %1559 = vmatprep.subr.bf16.mxu1 %v1665_v18  ;;  %v1673_v22 = vld [vmem:[%s1868_s16 + $0x20] sm:$0xff]   ;;  %v1674_v27 = vld [vmem:[%s1868_s16 + $0x8] sm:$0xff]   ;;  %v1677_v30 = vld [vmem:[%s1868_s16 + $0x30] sm:$0xff]  }
  0x3f   : > { %1486 = vmatprep.mubr.bf16.mxu0 %v1672_v21  ;;  %1494 = vmatprep.mubr.bf16.mxu1 %v1673_v22  ;;  %v1671_v26 = vld [vmem:[%s1856_s8] sm:$0xff]   ;;  %v1675_v28 = vld [vmem:[%s1868_s16 + $0x28] sm:$0xff]   ;;  %v1678_v31 = vld [vmem:[%s1868_s16 + $0x18] sm:$0xff]  }
  0x40   : > { %v1679_v32 = vld [vmem:[%s1868_s16 + $0x38] sm:$0xff]   ;;  %v422_v34 = vld [vmem:[#allocation2 + $0x10] sm:$0xff]  ;;  %v420_v38 = vld [vmem:[#allocation2 + $0x40] sm:$0xff] }
  0x41   : > { %1473 = vmatpush3.bf16.msra.mxu0 %v1665_v18  ;;  %1567 = vmatpush3.bf16.msra.mxu1 %v1665_v18  ;;  %v414_v33 = vld [vmem:[#allocation2 + $0x58] sm:$0xff]  ;;  %v412_v37 = vld [vmem:[#allocation2 + $0x30] sm:$0xff]  ;;  %v413_v49 = vld [vmem:[#allocation2] sm:$0xff] }
  0x42   : > { %1474 = vmatprep.subr.bf16.mxu0 %v1666_v19  ;;  %1560 = vmatprep.subr.bf16.mxu1 %v1666_v19  ;;  %v415_v43 = vld [vmem:[#allocation2 + $0x18] sm:$0xff]  ;;  %v421_v50 = vld [vmem:[#allocation2 + $0x20] sm:$0xff]  ;;  %v418_v55 = vld [vmem:[#allocation2 + $0x8] sm:$0xff] }
  0x43   : > { %v423_v44 = vld [vmem:[#allocation2 + $0x38] sm:$0xff]  ;;  %v416_v61 = vld [vmem:[#allocation2 + $0x50] sm:$0xff]  ;;  %v424_v62 = vld [vmem:[#allocation2 + $0x60] sm:$0xff] }
  0x44   : > { %v426_v56 = vld [vmem:[#allocation2 + $0x78] sm:$0xff]  ;;  %v419_v3 = vld [vmem:[#allocation2 + $0x48] sm:$0xff]  ;;  %v425_v10 = vld [vmem:[#allocation2 + $0x70] sm:$0xff] }
  0x45   : > { %1475 = vmatpush3.bf16.msra.mxu0 %v1666_v19  ;;  %1568 = vmatpush3.bf16.msra.mxu1 %v1666_v19  ;;  %v427_v4 = vld [vmem:[#allocation2 + $0x28] sm:$0xff] }
  0x46   : > { %1476 = vmatprep.subr.bf16.mxu0 %v1667_v20  ;;  %1561 = vmatprep.subr.bf16.mxu1 %v1667_v20  ;;  %v417_v9 = vld [vmem:[#allocation2 + $0x68] sm:$0xff] }
  0x49   : > { %1477 = vmatpush3.bf16.msra.mxu0 %v1667_v20  ;;  %1569 = vmatpush3.bf16.msra.mxu1 %v1667_v20 }
  0x4a   : > { %1478 = vmatprep.subr.bf16.mxu0 %v1668_v23  ;;  %1562 = vmatprep.subr.bf16.mxu1 %v1668_v23 }
  0x4d   : > { %1479 = vmatpush3.bf16.msra.mxu0 %v1668_v23  ;;  %1570 = vmatpush3.bf16.msra.mxu1 %v1668_v23 }
  0x4e   : > { %1480 = vmatprep.subr.bf16.mxu0 %v1669_v24  ;;  %1563 = vmatprep.subr.bf16.mxu1 %v1669_v24 }
  0x51   : > { %1481 = vmatpush3.bf16.msra.mxu0 %v1669_v24  ;;  %1571 = vmatpush3.bf16.msra.mxu1 %v1669_v24 }
  0x52   : > { %1482 = vmatprep.subr.bf16.mxu0 %v1670_v25  ;;  %1564 = vmatprep.subr.bf16.mxu1 %v1670_v25 }
  0x55   : > { %1483 = vmatpush3.bf16.msra.mxu0 %v1670_v25  ;;  %1572 = vmatpush3.bf16.msra.mxu1 %v1670_v25 }
  0x56   : > { %1484 = vmatprep.subr.bf16.mxu0 %v1671_v26  ;;  %1565 = vmatprep.subr.bf16.mxu1 %v1671_v26 }
  0x59   : > { %1485 = vmatpush3.bf16.msra.mxu0 %v1671_v26  ;;  %1573 = vmatpush3.bf16.msra.mxu1 %v1671_v26 }
  0x5c   : > { %1487 = vmatmul.mubr.bf16.vlgmr.msra.gmra.mxu0 %v1674_v27  ;;  %1495 = vmatmul.mubr.bf16.vlgmr.msra.gmra.mxu1 %v1675_v28 }
  0x5d   : > { %1490 = vmatprep.mubr.bf16.mxu0 %v1676_v29  ;;  %1498 = vmatprep.mubr.bf16.mxu1 %v1677_v30 }
  0x64   : > { %1491 = vmatmul.mubr.bf16.gmra.mxu0 %v1678_v31  ;;  %1499 = vmatmul.mubr.bf16.gmra.mxu1 %v1679_v32 }
 0x11c   : > { %v1488_v35 = vpop.f32.mrf.mxu0  ;;  %v1496_v36 = vpop.f32.mrf.mxu1 }
 0x11d   : > { %v655_v39 = vadd.f32 %v1488_v35, %v414_v33  ;;  %v663_v40 = vadd.f32 %v1496_v36, %v422_v34 }
 0x11e   : > { %v590_v41 = vpop.f32.mrf.mxu0  ;;  %v622_v42 = vpop.f32.mrf.mxu1 }
 0x11f   : > { %671 = vst [vmem:[#allocation2 + $0x58] sm:$0xff] %v655_v39  ;;  %679 = vst [vmem:[#allocation2 + $0x10] sm:$0xff] %v663_v40  ;;  %v653_v45 = vadd.f32 %v590_v41, %v412_v37  ;;  %v661_v46 = vadd.f32 %v622_v42, %v420_v38 }
 0x120   : > { %v1489_v47 = vpop.f32.mrf.mxu0  ;;  %v1497_v48 = vpop.f32.mrf.mxu1 }
 0x121   : > { %669 = vst [vmem:[#allocation2 + $0x30] sm:$0xff] %v653_v45  ;;  %677 = vst [vmem:[#allocation2 + $0x40] sm:$0xff] %v661_v46  ;;  %v656_v51 = vadd.f32 %v1489_v47, %v415_v43  ;;  %v664_v52 = vadd.f32 %v1497_v48, %v423_v44 }
 0x122   : > { %v593_v53 = vpop.f32.mrf.mxu0  ;;  %v625_v54 = vpop.f32.mrf.mxu1 }
 0x123   : > { %672 = vst [vmem:[#allocation2 + $0x18] sm:$0xff] %v656_v51  ;;  %680 = vst [vmem:[#allocation2 + $0x38] sm:$0xff] %v664_v52  ;;  %v654_v57 = vadd.f32 %v593_v53, %v413_v49  ;;  %v662_v58 = vadd.f32 %v625_v54, %v421_v50 }
 0x124   : > { %v1492_v59 = vpop.f32.mrf.mxu0  ;;  %v1500_v60 = vpop.f32.mrf.mxu1 }
 0x125   : > { %670 = vst [vmem:[#allocation2] sm:$0xff] %v654_v57  ;;  %678 = vst [vmem:[#allocation2 + $0x20] sm:$0xff] %v662_v58  ;;  %v659_v63 = vadd.f32 %v1492_v59, %v418_v55  ;;  %v667_v0 = vadd.f32 %v1500_v60, %v426_v56 }
 0x126   : > { %v606_v1 = vpop.f32.mrf.mxu0  ;;  %v638_v2 = vpop.f32.mrf.mxu1 }
 0x127   : > { %675 = vst [vmem:[#allocation2 + $0x8] sm:$0xff] %v659_v63  ;;  %683 = vst [vmem:[#allocation2 + $0x78] sm:$0xff] %v667_v0  ;;  %v657_v5 = vadd.f32 %v606_v1, %v416_v61  ;;  %v665_v6 = vadd.f32 %v638_v2, %v424_v62 }
 0x128   : > { %v1493_v7 = vpop.f32.mrf.mxu0  ;;  %v1501_v8 = vpop.f32.mrf.mxu1 }
 0x129   : > { %673 = vst [vmem:[#allocation2 + $0x50] sm:$0xff] %v657_v5  ;;  %681 = vst [vmem:[#allocation2 + $0x60] sm:$0xff] %v665_v6  ;;  %v660_v11 = vadd.f32 %v1493_v7, %v419_v3  ;;  %v668_v12 = vadd.f32 %v1501_v8, %v427_v4  ;;  %688 = sbr.rel (%p1298_p13) target bundleno = 316 (0x13c), region = 89 }
 0x12a   : > { %v609_v13 = vpop.f32.mrf.mxu0  ;;  %v641_v14 = vpop.f32.mrf.mxu1 }
 0x12b   : > { %676 = vst [vmem:[#allocation2 + $0x48] sm:$0xff] %v660_v11  ;;  %684 = vst [vmem:[#allocation2 + $0x28] sm:$0xff] %v668_v12  ;;  %v658_v15 = vadd.f32 %v609_v13, %v417_v9  ;;  %v666_v16 = vadd.f32 %v641_v14, %v425_v10 }
 0x12d   : > { %674 = vst [vmem:[#allocation2 + $0x68] sm:$0xff] %v658_v15  ;;  %682 = vst [vmem:[#allocation2 + $0x70] sm:$0xff] %v666_v16 }
 0x12e   : > { %v689_v17 = vld [vmem:[#allocation2 + $0x30] sm:$0xff]  ;;  %v1337_v18 = vld [vmem:[%s1856_s8] sm:$0xff]   ;;  %v691_v22 = vld [vmem:[#allocation2 + $0x58] sm:$0xff] }
 0x12f   : > { %v690_v19 = vld [vmem:[#allocation2] sm:$0xff]  ;;  %v1338_v20 = vunpack.c.l.bf16 %v1337_v18  ;;  %v1339_v21 = vunpack.c.h.bf16 %v1337_v18  ;;  %v1408_v23 = vld [vmem:[%s1856_s8 + $0x8] sm:$0xff]   ;;  %v692_v24 = vld [vmem:[#allocation2 + $0x18] sm:$0xff] }
 0x130   : > { %v1342_v25 = vunpack.c.l.bf16 %v1408_v23  ;;  %v1343_v26 = vunpack.c.h.bf16 %v1408_v23  ;;  %v693_v27 = vld [vmem:[#allocation2 + $0x50] sm:$0xff]  ;;  %v695_v34 = vld [vmem:[#allocation2 + $0x8] sm:$0xff]  ;;  %v1410_v35 = vld [vmem:[%s1856_s8 + $0x18] sm:$0xff]  }
 0x131   : > { %v1409_v28 = vld [vmem:[%s1856_s8 + $0x10] sm:$0xff]   ;;  %v737_v30 = vadd.f32 %v1338_v20, %v689_v17  ;;  %v738_v31 = vadd.f32 %v1339_v21, %v690_v19  ;;  %v1350_v39 = vunpack.c.l.bf16 %v1410_v35  ;;  %v1351_v40 = vunpack.c.h.bf16 %v1410_v35  ;;  %v697_v41 = vld [vmem:[#allocation2 + $0x40] sm:$0xff]  ;;  %v1412_v49 = vld [vmem:[%s1856_s8 + $0x28] sm:$0xff]  }
 0x132   : > { %v1346_v32 = vunpack.c.l.bf16 %v1409_v28  ;;  %v1347_v33 = vunpack.c.h.bf16 %v1409_v28  ;;  %v696_v36 = vld [vmem:[#allocation2 + $0x48] sm:$0xff]  ;;  %v739_v37 = vadd.f32 %v1342_v25, %v691_v22  ;;  %v740_v38 = vadd.f32 %v1343_v26, %v692_v24  ;;  %v1411_v42 = vld [vmem:[%s1856_s8 + $0x20] sm:$0xff]   ;;  %v699_v48 = vld [vmem:[#allocation2 + $0x10] sm:$0xff] }
 0x133   : > { %v698_v43 = vld [vmem:[#allocation2 + $0x20] sm:$0xff]  ;;  %753 = vst [vmem:[#allocation2 + $0x30] sm:$0xff] %v737_v30  ;;  %754 = vst [vmem:[#allocation2] sm:$0xff] %v738_v31  ;;  %v1354_v46 = vunpack.c.l.bf16 %v1411_v42  ;;  %v1355_v47 = vunpack.c.h.bf16 %v1411_v42  ;;  %v700_v50 = vld [vmem:[#allocation2 + $0x38] sm:$0xff]  ;;  %v743_v51 = vadd.f32 %v1350_v39, %v695_v34  ;;  %v744_v52 = vadd.f32 %v1351_v40, %v696_v36 }
 0x134   : > { %v694_v29 = vld [vmem:[#allocation2 + $0x68] sm:$0xff]  ;;  %v741_v44 = vadd.f32 %v1346_v32, %v693_v27  ;;  %755 = vst [vmem:[#allocation2 + $0x58] sm:$0xff] %v739_v37  ;;  %756 = vst [vmem:[#allocation2 + $0x18] sm:$0xff] %v740_v38  ;;  %v1358_v53 = vunpack.c.l.bf16 %v1412_v49  ;;  %v1359_v54 = vunpack.c.h.bf16 %v1412_v49  ;;  %v701_v55 = vld [vmem:[#allocation2 + $0x60] sm:$0xff] }
 0x135   : > { %v742_v45 = vadd.f32 %v1347_v33, %v694_v29  ;;  %v1413_v56 = vld [vmem:[%s1856_s8 + $0x30] sm:$0xff]   ;;  %v745_v58 = vadd.f32 %v1354_v46, %v697_v41  ;;  %v746_v59 = vadd.f32 %v1355_v47, %v698_v43  ;;  %v703_v62 = vld [vmem:[#allocation2 + $0x78] sm:$0xff]  ;;  %v704_v0 = vld [vmem:[#allocation2 + $0x28] sm:$0xff]  ;;  %759 = vst [vmem:[#allocation2 + $0x8] sm:$0xff] %v743_v51 }
 0x136   : > { %v702_v57 = vld [vmem:[#allocation2 + $0x70] sm:$0xff]  ;;  %757 = vst [vmem:[#allocation2 + $0x50] sm:$0xff] %v741_v44  ;;  %v1362_v60 = vunpack.c.l.bf16 %v1413_v56  ;;  %v1363_v61 = vunpack.c.h.bf16 %v1413_v56  ;;  %v1414_v63 = vld [vmem:[%s1856_s8 + $0x38] sm:$0xff]   ;;  %760 = vst [vmem:[#allocation2 + $0x48] sm:$0xff] %v744_v52  ;;  %v747_v1 = vadd.f32 %v1358_v53, %v699_v48  ;;  %v748_v2 = vadd.f32 %v1359_v54, %v700_v50 }
 0x137   : > { %758 = vst [vmem:[#allocation2 + $0x68] sm:$0xff] %v742_v45  ;;  %v1366_v3 = vunpack.c.l.bf16 %v1414_v63  ;;  %v1367_v4 = vunpack.c.h.bf16 %v1414_v63  ;;  %761 = vst [vmem:[#allocation2 + $0x40] sm:$0xff] %v745_v58 }
 0x138   : > { %762 = vst [vmem:[#allocation2 + $0x20] sm:$0xff] %v746_v59  ;;  %v749_v5 = vadd.f32 %v1362_v60, %v701_v55  ;;  %v750_v6 = vadd.f32 %v1363_v61, %v702_v57  ;;  %763 = vst [vmem:[#allocation2 + $0x10] sm:$0xff] %v747_v1 }
 0x139   : > { %764 = vst [vmem:[#allocation2 + $0x38] sm:$0xff] %v748_v2  ;;  %v751_v7 = vadd.f32 %v1366_v3, %v703_v62  ;;  %v752_v8 = vadd.f32 %v1367_v4, %v704_v0 }
 0x13a   : > { %765 = vst [vmem:[#allocation2 + $0x60] sm:$0xff] %v749_v5  ;;  %766 = vst [vmem:[#allocation2 + $0x70] sm:$0xff] %v750_v6 }
 0x13b   : > { %767 = vst [vmem:[#allocation2 + $0x78] sm:$0xff] %v751_v7  ;;  %768 = vst [vmem:[#allocation2 + $0x28] sm:$0xff] %v752_v8 }
 0x13c PF: > { %p1299_p0 = scmp.ne.s32.totalorder %s1720_s20, 1 }
 0x13e   : > { %772 = sbr.rel (%p1299_p0) target bundleno = 571 (0x23b), region = 93 }
 0x143   : > { %v804_v9 = vld [vmem:[%s2017_s2 + $0x78] sm:$0xff]  ;;  %v803_v10 = vld [vmem:[%s2017_s2 + $0x70] sm:$0xff]  ;;  %v802_v11 = vld [vmem:[%s2017_s2 + $0x68] sm:$0xff]  ;;  %v1739_v37 = vmov 0  }
 0x144   : > { %1502 = vmatprep.subr.mxu0 %v804_v9  ;;  %1574 = vmatprep.subr.mxu1 %v804_v9  ;;  %v801_v12 = vld [vmem:[%s2017_s2 + $0x60] sm:$0xff]  ;;  %v800_v13 = vld [vmem:[%s2017_s2 + $0x58] sm:$0xff]  ;;  %v799_v14 = vld [vmem:[%s2017_s2 + $0x50] sm:$0xff] }
 0x145   : > { %1503 = vmatpush3.msra.mxu0 %v804_v9  ;;  %1590 = vmatpush3.msra.mxu1 %v804_v9  ;;  %v798_v15 = vld [vmem:[%s2017_s2 + $0x48] sm:$0xff]  ;;  %v797_v16 = vld [vmem:[%s2017_s2 + $0x40] sm:$0xff]  ;;  %v796_v17 = vld [vmem:[%s2017_s2 + $0x38] sm:$0xff] }
 0x146   : > { %1504 = vmatprep.subr.mxu0 %v803_v10  ;;  %1575 = vmatprep.subr.mxu1 %v803_v10  ;;  %v795_v18 = vld [vmem:[%s2017_s2 + $0x30] sm:$0xff]  ;;  %v794_v19 = vld [vmem:[%s2017_s2 + $0x28] sm:$0xff]  ;;  %v793_v20 = vld [vmem:[%s2017_s2 + $0x20] sm:$0xff] }
 0x147   : > { %1505 = vmatpush3.msra.mxu0 %v803_v10  ;;  %1591 = vmatpush3.msra.mxu1 %v803_v10  ;;  %v792_v21 = vld [vmem:[%s2017_s2 + $0x18] sm:$0xff]  ;;  %v791_v22 = vld [vmem:[%s2017_s2 + $0x10] sm:$0xff]  ;;  %v790_v23 = vld [vmem:[%s2017_s2 + $0x8] sm:$0xff] }
 0x148   : > { %1506 = vmatprep.subr.mxu0 %v802_v11  ;;  %1576 = vmatprep.subr.mxu1 %v802_v11  ;;  %v789_v24 = vld [vmem:[%s2017_s2] sm:$0xff]  ;;  %v773_v25 = vld [vmem:[#allocation2 + $0x30] sm:$0xff]  ;;  %v775_v29 = vld [vmem:[#allocation2 + $0x58] sm:$0xff] }
 0x149   : > { %1507 = vmatpush3.msra.mxu0 %v802_v11  ;;  %1592 = vmatpush3.msra.mxu1 %v802_v11  ;;  %v781_v26 = vld [vmem:[#allocation2 + $0x40] sm:$0xff]  ;;  %v783_v30 = vld [vmem:[#allocation2 + $0x10] sm:$0xff]  ;;  %v776_v33 = vld [vmem:[#allocation2 + $0x18] sm:$0xff] }
 0x14a   : > { %1508 = vmatprep.subr.mxu0 %v801_v12  ;;  %1577 = vmatprep.subr.mxu1 %v801_v12  ;;  %v774_v27 = vld [vmem:[#allocation2] sm:$0xff]  ;;  %v807_v31 = vld [vmem:[%s1861_s13 + $0x10] sm:$0xff]  ;;  %v784_v34 = vld [vmem:[#allocation2 + $0x38] sm:$0xff] }
 0x14b   : > { %1509 = vmatpush3.msra.mxu0 %v801_v12  ;;  %1593 = vmatpush3.msra.mxu1 %v801_v12  ;;  %v782_v28 = vld [vmem:[#allocation2 + $0x20] sm:$0xff]  ;;  %v777_v35 = vld [vmem:[#allocation2 + $0x50] sm:$0xff]  ;;  %v808_v38 = vld [vmem:[%s1861_s13 + $0x18] sm:$0xff] }
 0x14c   : > { %1510 = vmatprep.subr.mxu0 %v800_v13  ;;  %1578 = vmatprep.subr.mxu1 %v800_v13  ;;  %v805_v32 = vld [vmem:[%s1861_s13] sm:$0xff]  ;;  %v806_v39 = vld [vmem:[%s1861_s13 + $0x8] sm:$0xff]  ;;  %v786_v41 = vld [vmem:[#allocation2 + $0x70] sm:$0xff] }
 0x14d   : > { %1511 = vmatpush3.msra.mxu0 %v800_v13  ;;  %1594 = vmatpush3.msra.mxu1 %v800_v13  ;;  %v785_v36 = vld [vmem:[#allocation2 + $0x60] sm:$0xff]  ;;  %v778_v40 = vld [vmem:[#allocation2 + $0x68] sm:$0xff]  ;;  %v787_v43 = vld [vmem:[#allocation2 + $0x78] sm:$0xff] }
 0x14e   : > { %1512 = vmatprep.subr.mxu0 %v799_v14  ;;  %1579 = vmatprep.subr.mxu1 %v799_v14  ;;  %v779_v42 = vld [vmem:[#allocation2 + $0x8] sm:$0xff]  ;;  %v809_v45 = vld [vmem:[%s1861_s13 + $0x20] sm:$0xff]  ;;  %v812_v48 = vld [vmem:[%s1861_s13 + $0x38] sm:$0xff] }
 0x14f   : > { %1513 = vmatpush3.msra.mxu0 %v799_v14  ;;  %1595 = vmatpush3.msra.mxu1 %v799_v14  ;;  %v810_v44 = vld [vmem:[%s1861_s13 + $0x28] sm:$0xff]  ;;  %v811_v49 = vld [vmem:[%s1861_s13 + $0x30] sm:$0xff]  ;;  %v813_v51 = vld [vmem:[%s1861_s13 + $0x40] sm:$0xff] }
 0x150   : > { %1514 = vmatprep.subr.mxu0 %v798_v15  ;;  %1580 = vmatprep.subr.mxu1 %v798_v15  ;;  %v780_v46 = vld [vmem:[#allocation2 + $0x48] sm:$0xff]  ;;  %v816_v52 = vld [vmem:[%s1861_s13 + $0x58] sm:$0xff]  ;;  %v815_v53 = vld [vmem:[%s1861_s13 + $0x50] sm:$0xff] }
 0x151   : > { %1515 = vmatpush3.msra.mxu0 %v798_v15  ;;  %1596 = vmatpush3.msra.mxu1 %v798_v15  ;;  %v788_v47 = vld [vmem:[#allocation2 + $0x28] sm:$0xff]  ;;  %v817_v55 = vld [vmem:[%s1861_s13 + $0x60] sm:$0xff]  ;;  %v820_v56 = vld [vmem:[%s1861_s13 + $0x78] sm:$0xff] }
 0x152   : > { %1516 = vmatprep.subr.mxu0 %v797_v16  ;;  %1581 = vmatprep.subr.mxu1 %v797_v16  ;;  %v814_v50 = vld [vmem:[%s1861_s13 + $0x48] sm:$0xff]  ;;  %v819_v57 = vld [vmem:[%s1861_s13 + $0x70] sm:$0xff]  ;;  %v1967_v4 = vld [vmem:[%s2018_s3] ss:$0 sm:$0xff] }
 0x153   : > { %1517 = vmatpush3.msra.mxu0 %v797_v16  ;;  %1597 = vmatpush3.msra.mxu1 %v797_v16  ;;  %v818_v54 = vld [vmem:[%s1861_s13 + $0x68] sm:$0xff] }
 0x154   : > { %1518 = vmatprep.subr.mxu0 %v796_v17  ;;  %1582 = vmatprep.subr.mxu1 %v796_v17 }
 0x155   : > { %1519 = vmatpush3.msra.mxu0 %v796_v17  ;;  %1598 = vmatpush3.msra.mxu1 %v796_v17 }
 0x156   : > { %1520 = vmatprep.subr.mxu0 %v795_v18  ;;  %1583 = vmatprep.subr.mxu1 %v795_v18 }
 0x157   : > { %1521 = vmatpush3.msra.mxu0 %v795_v18  ;;  %1599 = vmatpush3.msra.mxu1 %v795_v18 }
 0x158   : > { %1522 = vmatprep.subr.mxu0 %v794_v19  ;;  %1584 = vmatprep.subr.mxu1 %v794_v19 }
 0x159   : > { %1523 = vmatpush3.msra.mxu0 %v794_v19  ;;  %1600 = vmatpush3.msra.mxu1 %v794_v19 }
 0x15a   : > { %1524 = vmatprep.subr.mxu0 %v793_v20  ;;  %1585 = vmatprep.subr.mxu1 %v793_v20 }
 0x15b   : > { %1525 = vmatpush3.msra.mxu0 %v793_v20  ;;  %1601 = vmatpush3.msra.mxu1 %v793_v20 }
 0x15c   : > { %1526 = vmatprep.subr.mxu0 %v792_v21  ;;  %1586 = vmatprep.subr.mxu1 %v792_v21 }
 0x15d   : > { %1527 = vmatpush3.msra.mxu0 %v792_v21  ;;  %1602 = vmatpush3.msra.mxu1 %v792_v21 }
 0x15e   : > { %1528 = vmatprep.subr.mxu0 %v791_v22  ;;  %1587 = vmatprep.subr.mxu1 %v791_v22 }
 0x15f   : > { %1529 = vmatpush3.msra.mxu0 %v791_v22  ;;  %1603 = vmatpush3.msra.mxu1 %v791_v22 }
 0x160   : > { %1530 = vmatprep.subr.mxu0 %v790_v23  ;;  %1588 = vmatprep.subr.mxu1 %v790_v23 }
 0x161   : > { %1531 = vmatpush3.msra.mxu0 %v790_v23  ;;  %1604 = vmatpush3.msra.mxu1 %v790_v23 }
 0x162   : > { %1532 = vmatprep.subr.mxu0 %v789_v24  ;;  %1589 = vmatprep.subr.mxu1 %v789_v24 }
 0x163   : > { %1533 = vmatpush3.msra.mxu0 %v789_v24  ;;  %1605 = vmatpush3.msra.mxu1 %v789_v24 }
 0x164   : > { %1534 = vmatprep.mubr.f32.mxu0 %v773_v25  ;;  %1546 = vmatprep.mubr.f32.mxu1 %v781_v26 }
 0x165   : > { %1535 = vmatmul.mubr.f32.vlgmr.msra.gmra.mxu0 %v774_v27  ;;  %1547 = vmatmul.mubr.f32.vlgmr.msra.gmra.mxu1 %v782_v28 }
 0x166   : > { %1537 = vmatprep.mubr.f32.mxu0 %v775_v29  ;;  %1549 = vmatprep.mubr.f32.mxu1 %v783_v30 }
 0x167   : > { %1681 = vset.pattern.permute.xlu1 %v1739_v37  ;;  %1680 = vset.pattern.permute.xlu0 %v1739_v37 }
 0x168   : > { %834 = vperm.xlu1 %1681, %v807_v31   ;;  %824 = vperm.xlu0 %1680, %v805_v32  }
 0x169   : > { %1538 = vmatmul.mubr.f32.gmra.mxu0 %v776_v33  ;;  %1550 = vmatmul.mubr.f32.gmra.mxu1 %v784_v34 }
 0x16a   : > { %1540 = vmatprep.mubr.f32.mxu0 %v777_v35  ;;  %1552 = vmatprep.mubr.f32.mxu1 %v785_v36 }
 0x16c   : > { %839 = vperm.xlu1 %1681, %v808_v38   ;;  %829 = vperm.xlu0 %1680, %v806_v39  }
 0x16d   : > { %1541 = vmatmul.mubr.f32.gmra.mxu0 %v778_v40  ;;  %1553 = vmatmul.mubr.f32.gmra.mxu1 %v786_v41 }
 0x16e   : > { %1543 = vmatprep.mubr.f32.mxu0 %v779_v42  ;;  %1555 = vmatprep.mubr.f32.mxu1 %v787_v43 }
 0x170   : > { %849 = vperm.xlu1 %1681, %v810_v44   ;;  %844 = vperm.xlu0 %1680, %v809_v45  }
 0x171   : > { %1544 = vmatmul.mubr.f32.gmra.mxu0 %v780_v46  ;;  %1556 = vmatmul.mubr.f32.gmra.mxu1 %v788_v47 }
 0x174   : > { %859 = vperm.xlu1 %1681, %v812_v48   ;;  %854 = vperm.xlu0 %1680, %v811_v49  }
 0x178   : > { %869 = vperm.xlu1 %1681, %v814_v50   ;;  %864 = vperm.xlu0 %1680, %v813_v51  }
 0x17c   : > { %879 = vperm.xlu1 %1681, %v816_v52   ;;  %874 = vperm.xlu0 %1680, %v815_v53  }
 0x180   : > { %889 = vperm.xlu1 %1681, %v818_v54   ;;  %884 = vperm.xlu0 %1680, %v817_v55  }
 0x184   : > { %899 = vperm.xlu1 %1681, %v820_v56   ;;  %894 = vperm.xlu0 %1680, %v819_v57  }
 0x1e3   : > { %v835_v58 = vpop.permute.xlu1 %834  ;;  %v825_v59 = vpop.permute.xlu0 %824 }
 0x1e4   : > { %v908_v11 = vmul.f32 %v1967_v4, %v825_v59  ;;  %v910_v29 = vmul.f32 %v1967_v4, %v835_v58 }
 0x1e7   : > { %v840_v60 = vpop.permute.xlu1 %839  ;;  %v830_v61 = vpop.permute.xlu0 %829 }
 0x1e8   : > { %v909_v6 = vmul.f32 %v1967_v4, %v830_v61  ;;  %v911_v20 = vmul.f32 %v1967_v4, %v840_v60 }
 0x1eb   : > { %v850_v62 = vpop.permute.xlu1 %849  ;;  %v845_v63 = vpop.permute.xlu0 %844 }
 0x1ec   : > { %v913_v35 = vmul.f32 %v1967_v4, %v850_v62  ;;  %v912_v43 = vmul.f32 %v1967_v4, %v845_v63 }
 0x1ef   : > { %v860_v0 = vpop.permute.xlu1 %859  ;;  %v1962_v1 = vpop.permute.xlu0 %854 }
 0x1f0   : > { %v915_v57 = vmul.f32 %v1967_v4, %v860_v0 }
 0x1f3   : > { %v870_v2 = vpop.permute.xlu1 %869  ;;  %v865_v3 = vpop.permute.xlu0 %864 }
 0x1f4   : > { %v917_v7 = vmul.f32 %v1967_v4, %v870_v2  ;;  %v916_v12 = vmul.f32 %v1967_v4, %v865_v3 }
 0x1f7   : > { %v880_v5 = vpop.permute.xlu1 %879  ;;  %v875_v8 = vpop.permute.xlu0 %874 }
 0x1f8   : > { %v919_v21 = vmul.f32 %v1967_v4, %v880_v5  ;;  %v918_v30 = vmul.f32 %v1967_v4, %v875_v8 }
 0x1fb   : > { %v890_v17 = vpop.permute.xlu1 %889  ;;  %v885_v24 = vpop.permute.xlu0 %884 }
 0x1fc   : > { %v921_v36 = vmul.f32 %v1967_v4, %v890_v17  ;;  %v920_v44 = vmul.f32 %v1967_v4, %v885_v24 }
 0x1ff   : > { %v900_v45 = vpop.permute.xlu1 %899  ;;  %v895_v54 = vpop.permute.xlu0 %894 }
 0x200   : > { %v923_v58 = vmul.f32 %v1967_v4, %v900_v45 }
 0x225   : > { %v1536_v9 = vpop.f32.mrf.mxu0  ;;  %v1548_v10 = vpop.f32.mrf.mxu1 }
 0x226   : > { %v996_v13 = vadd.f32 %v1536_v9, %v909_v6  ;;  %v1036_v14 = vadd.f32 %v1548_v10, %v917_v7  ;;  %v914_v6 = vmul.f32 %v1967_v4, %v1962_v1  ;;  %v922_v7 = vmul.f32 %v1967_v4, %v895_v54 }
 0x227   : > { %v990_v15 = vpop.f32.mrf.mxu0  ;;  %v1030_v16 = vpop.f32.mrf.mxu1 }
 0x228   : > { %v991_v18 = vadd.f32 %v990_v15, %v908_v11  ;;  %v1031_v19 = vadd.f32 %v1030_v16, %v916_v12  ;;  %v1070_v25 = vmax.f32 %v996_v13, 0.0  ;;  %v1078_v26 = vmax.f32 %v1036_v14, 0.0 }
 0x229   : > { %v1539_v22 = vpop.f32.mrf.mxu0  ;;  %v1551_v23 = vpop.f32.mrf.mxu1 }
 0x22a   : > { %v1069_v27 = vmax.f32 %v991_v18, 0.0  ;;  %v1077_v28 = vmax.f32 %v1031_v19, 0.0  ;;  %v1006_v31 = vadd.f32 %v1539_v22, %v911_v20  ;;  %v1046_v32 = vadd.f32 %v1551_v23, %v919_v21 }
 0x22b   : > { %v1000_v33 = vpop.f32.mrf.mxu0  ;;  %v1040_v34 = vpop.f32.mrf.mxu1 }
 0x22c   : > { %v1371_v37 = vpack.c.bf16 %v1070_v25, %v1069_v27  ;;  %v1391_v38 = vpack.c.bf16 %v1078_v26, %v1077_v28  ;;  %v1001_v39 = vadd.f32 %v1000_v33, %v910_v29  ;;  %v1041_v40 = vadd.f32 %v1040_v34, %v918_v30 }
 0x22d   : > { %v1542_v41 = vpop.f32.mrf.mxu0  ;;  %v1554_v42 = vpop.f32.mrf.mxu1  ;;  %v1072_v48 = vmax.f32 %v1006_v31, 0.0  ;;  %v1080_v49 = vmax.f32 %v1046_v32, 0.0 }
 0x22e   : > { %1372 = vst [vmem:[%s1866_s15] sm:$0xff] %v1371_v37   ;;  %1418 = vst [vmem:[%s1866_s15 + $0x20] sm:$0xff] %v1391_v38   ;;  %v1016_v46 = vadd.f32 %v1542_v41, %v913_v35  ;;  %v1056_v47 = vadd.f32 %v1554_v42, %v921_v36  ;;  %v1071_v50 = vmax.f32 %v1001_v39, 0.0  ;;  %v1079_v51 = vmax.f32 %v1041_v40, 0.0 }
 0x22f   : > { %v1010_v52 = vpop.f32.mrf.mxu0  ;;  %v1050_v53 = vpop.f32.mrf.mxu1 }
 0x230   : > { %v1011_v55 = vadd.f32 %v1010_v52, %v912_v43  ;;  %v1051_v56 = vadd.f32 %v1050_v53, %v920_v44  ;;  %v1376_v59 = vpack.c.bf16 %v1072_v48, %v1071_v50  ;;  %v1396_v60 = vpack.c.bf16 %v1080_v49, %v1079_v51 }
 0x231   : > { %v1545_v61 = vpop.f32.mrf.mxu0  ;;  %v1557_v62 = vpop.f32.mrf.mxu1  ;;  %v1074_v63 = vmax.f32 %v1016_v46, 0.0  ;;  %v1082_v2 = vmax.f32 %v1056_v47, 0.0 }
 0x232   : > { %v1073_v3 = vmax.f32 %v1011_v55, 0.0  ;;  %v1081_v5 = vmax.f32 %v1051_v56, 0.0  ;;  %1415 = vst [vmem:[%s1866_s15 + $0x8] sm:$0xff] %v1376_v59   ;;  %1419 = vst [vmem:[%s1866_s15 + $0x28] sm:$0xff] %v1396_v60   ;;  %v1026_v0 = vadd.f32 %v1545_v61, %v915_v57  ;;  %v1066_v8 = vadd.f32 %v1557_v62, %v923_v58 }
 0x233   : > { %v1020_v9 = vpop.f32.mrf.mxu0  ;;  %v1060_v10 = vpop.f32.mrf.mxu1 }
 0x234   : > { %v1381_v11 = vpack.c.bf16 %v1074_v63, %v1073_v3  ;;  %v1401_v12 = vpack.c.bf16 %v1082_v2, %v1081_v5  ;;  %v1021_v13 = vadd.f32 %v1020_v9, %v914_v6  ;;  %v1061_v14 = vadd.f32 %v1060_v10, %v922_v7 }
 0x235   : > { %v1076_v15 = vmax.f32 %v1026_v0, 0.0  ;;  %v1084_v16 = vmax.f32 %v1066_v8, 0.0 }
 0x236   : > { %1416 = vst [vmem:[%s1866_s15 + $0x10] sm:$0xff] %v1381_v11   ;;  %1420 = vst [vmem:[%s1866_s15 + $0x30] sm:$0xff] %v1401_v12   ;;  %v1075_v17 = vmax.f32 %v1021_v13, 0.0  ;;  %v1083_v1 = vmax.f32 %v1061_v14, 0.0 }
 0x238   : > { %v1386_v18 = vpack.c.bf16 %v1076_v15, %v1075_v17  ;;  %v1406_v4 = vpack.c.bf16 %v1084_v16, %v1083_v1 }
 0x23a   : > { %1417 = vst [vmem:[%s1866_s15 + $0x18] sm:$0xff] %v1386_v18   ;;  %1421 = vst [vmem:[%s1866_s15 + $0x38] sm:$0xff] %v1406_v4  }
 0x23b PF: > { %s15_s24 = sadd.s32 1, %s1736_s24   ;;  %s2021_s18 = smov %s1716_s19 }
 0x23c   : > { %p12_p1 = scmp.ge.s32.totalorder %s15_s24, 6   ;;  %s2022_s19 = smov %s1821_s6 }
 0x23d   : > { %s2023_s20 = smov %s1728_s22  ;;  %s2024_s21 = smov %s1732_s23 }
 0x23e   : > { %s2025_s22 = smov %s2028_s25  ;;  %s2026_s23 = smov %s2032_s26 }
 0x23f   :  { %14 = sbr.rel (!%p12_p1) target bundleno = 4 (0x4), region = 134 }

</bundles_post_ra>
